<compile_context>
chip_gen: v7x
topology: tpu7x:2x2x1
jax: 0.10.0
libtpu: 0.0.40
codegen_flags: <defaults>
</compile_context>

<pallas_src>
import functools
import math

import jax
import jax.numpy as jnp
from jax.experimental import pallas as pl
from jax.experimental.pallas import tpu as pltpu

LN_EPS = 1e-5


def _layer_norm(x, gamma, beta):
    # PyTorch LayerNorm: biased variance, eps inside the sqrt.
    mean = jnp.mean(x, axis=-1, keepdims=True)
    var = jnp.mean((x - mean) ** 2, axis=-1, keepdims=True)
    inv = jax.lax.rsqrt(var + LN_EPS)
    return (x - mean) * inv * gamma + beta


def encoder_kernel(
    x_ref,                    # (B, S, E)  f32 batch tile
    wq_ref, wk_ref, wv_ref,   # (E, E)     matmul_dtype, stored transposed (y = x @ W)
    wo_ref, bo_ref,           # (E, E) matmul_dtype, (1, E) f32
    ln1g_ref, ln1b_ref,       # (1, E) f32
    w1_ref, b1_ref,           # (E, Hff) matmul_dtype, (1, Hff) f32
    w2_ref, b2_ref,           # (Hff, E) matmul_dtype, (1, E) f32
    ln2g_ref, ln2b_ref,       # (1, E) f32
    out_ref,                  # (B, S, E) f32
    attn_ref,                 # (B, S, S) attn_dtype
    *,
    matmul_dtype,
    approx_softmax,
):
    f32 = jnp.float32
    B, S, E = x_ref.shape

    # Flatten batch*seq rows so every row-parallel matmul feeds the MXU with
    # M = B*S rows per pass.  (S is a multiple of 8 here, so the reshape is a
    # free relayout.)
    x = x_ref[...].reshape(B * S, E)                # residual path stays f32
    xm = x.astype(matmul_dtype)                     # single activation cast

    def mm(a, w_ref):
        # Weights already live in matmul_dtype (pre-cast in the wrapper).
        return jnp.dot(a, w_ref[...], preferred_element_type=f32)

    # --- Single-head self-attention -----------------------------------------
    # Fold 1/sqrt(E) into q: VPU pass on an (M,E) array, not the (B,S,S) energy.
    q = mm(xm, wq_ref) * (1.0 / math.sqrt(E))
    k = mm(xm, wk_ref)
    v = mm(xm, wv_ref)

    qb = q.reshape(B, S, E).astype(matmul_dtype)
    kb = k.reshape(B, S, E).astype(matmul_dtype)
    vb = v.reshape(B, S, E).astype(matmul_dtype)

    # Batched QK^T: contraction over the shared last dim of both operands
    # (A @ B^T form); no explicit k.T materialized through the XLU.
    energy = jnp.einsum("bqe,bke->bqk", qb, kb, preferred_element_type=f32)

    m = jnp.max(energy, axis=-1, keepdims=True)
    p = jnp.exp(energy - m)
    denom = jnp.sum(p, axis=-1, keepdims=True)
    if approx_softmax:
        attn = p * pl.reciprocal(denom, approx=True)    # EUP slot (bf16 fast path)
    else:
        attn = p / denom                                # exact: parity with reference

    ctx = jnp.einsum("bqk,bke->bqe", attn.astype(matmul_dtype), vb,
                     preferred_element_type=f32).reshape(B * S, E)

    o = mm(ctx.astype(matmul_dtype), wo_ref) + bo_ref[...]
    # dropout(p=0.0 / eval) is the identity
    o = o + x
    y1 = _layer_norm(o, ln1g_ref[...], ln1b_ref[...])

    # --- Position-wise feed forward ------------------------------------------
    # Keep the (B*S, Hff) activation only in matmul_dtype (largest live temp).
    h = jnp.maximum(mm(y1.astype(matmul_dtype), w1_ref) + b1_ref[...],
                    0.0).astype(matmul_dtype)
    f = mm(h, w2_ref) + b2_ref[...]
    y2 = _layer_norm(f + y1, ln2g_ref[...], ln2b_ref[...])

    out_ref[...] = y2.reshape(B, S, E).astype(out_ref.dtype)
    attn_ref[...] = attn.astype(attn_ref.dtype)


def _pick_batch_tile(N, S):
    # Target >= 256 MXU rows (v6e/v7x 256x256 MXU; still fine on v5e), keep at
    # least 2 grid steps when N allows (so the "parallel" axis shards across
    # v7x's two TensorCores), and restrict to divisors of N so no tail rows
    # carry garbage through exp()/softmax.
    target = max(1, -(-256 // S))
    if N >= 2:
        target = min(target, N // 2)
    target = max(1, min(target, N))
    return max(d for d in range(1, target + 1) if N % d == 0)


def encoder_forward(x, params, *, matmul_dtype=jnp.float32,
                    attn_dtype=jnp.float32, batch_tile=None,
                    approx_softmax=None, weight_buffers=1):
    N, S, E = x.shape
    Hff = params["w1"].shape[1]

    if approx_softmax is None:
        approx_softmax = jnp.dtype(matmul_dtype) != jnp.dtype(jnp.float32)

    if batch_tile is None:
        batch_tile = _pick_batch_tile(N, S)
    B = batch_tile
    if N % B != 0:
        raise ValueError(f"batch_tile ({B}) must divide the batch ({N}): tail rows "
                         "would feed garbage into exp/softmax")
    grid = (N // B,)

    # Pre-cast matmul weights once in the wrapper (no-op for f32): halves their
    # HBM->VMEM bytes and removes the per-grid-step VPU cast in the kernel.
    mmd = matmul_dtype
    wq = params["wq"].astype(mmd)
    wk = params["wk"].astype(mmd)
    wv = params["wv"].astype(mmd)
    wo = params["wo"].astype(mmd)
    w1 = params["w1"].astype(mmd)
    w2 = params["w2"].astype(mmd)

    mm_bytes = jnp.dtype(mmd).itemsize
    attn_bytes = jnp.dtype(attn_dtype).itemsize
    M = B * S

    # VMEM budget: double-buffered x/out/attn blocks + weights (single- or
    # double-buffered) + live intermediates, with headroom.
    weight_elems = 4 * E * E + 2 * E * Hff
    weight_bufs = 1 if weight_buffers == 1 else 2
    block_bytes = (2 * (B * S * E * 4) * 2                    # x + out, double-buffered
                   + 2 * (B * S * S * attn_bytes)             # attn, double-buffered
                   + weight_elems * mm_bytes * weight_bufs
                   + (5 * E + Hff) * 4 * 2)                   # biases / LN params
    interm_bytes = (3 * M * E * (4 + mm_bytes)                # q,k,v (+ casts)
                    + 3 * B * S * S * 4                       # energy, p, attn
                    + 4 * M * E * 4                           # ctx, o, y1, y2
                    + M * Hff * (4 + mm_bytes))               # FFN hidden
    vmem_limit = int(1.25 * (block_bytes + interm_bytes))
    vmem_limit = min(max(vmem_limit, 32 << 20), 64 << 20)

    compiler_params = pltpu.CompilerParams(
        dimension_semantics=("parallel",),
        vmem_limit_bytes=vmem_limit,
    )

    # Advisory cost estimate so XLA schedules surrounding ops sensibly.
    flops = int(2 * N * S * E * (4 * E + 2 * S + 2 * Hff))
    transcendentals = int(N * S * (S + 3))                    # exp + recip + 2x rsqrt
    bytes_accessed = int(2 * 4 * N * S * E + attn_bytes * N * S * S
                         + mm_bytes * weight_elems + 4 * (5 * E + Hff))
    cost = pl.CostEstimate(flops=flops, transcendentals=transcendentals,
                           bytes_accessed=bytes_accessed)

    kernel = functools.partial(encoder_kernel, matmul_dtype=mmd,
                               approx_softmax=approx_softmax)

    def weight_spec(shape, buffers):
        index_map = lambda n: (0,) * len(shape)
        if buffers is None:
            return pl.BlockSpec(shape, index_map)
        # Grid-invariant (constant index_map): single-buffering halves weight VMEM.
        return pl.BlockSpec(shape, index_map, pipeline_mode=pl.Buffered(buffers))

    def build(buffers):
        grid_spec = pltpu.PrefetchScalarGridSpec(
            num_scalar_prefetch=0,
            grid=grid,
            in_specs=[
                pl.BlockSpec((B, S, E), lambda n: (n, 0, 0)),   # x (batch tile)
                weight_spec((E, E), buffers),                   # wq
                weight_spec((E, E), buffers),                   # wk
                weight_spec((E, E), buffers),                   # wv
                weight_spec((E, E), buffers),                   # wo
                weight_spec((1, E), buffers),                   # bo
                weight_spec((1, E), buffers),                   # ln1 gamma
                weight_spec((1, E), buffers),                   # ln1 beta
                weight_spec((E, Hff), buffers),                 # w1
                weight_spec((1, Hff), buffers),                 # b1
                weight_spec((Hff, E), buffers),                 # w2
                weight_spec((1, E), buffers),                   # b2
                weight_spec((1, E), buffers),                   # ln2 gamma
                weight_spec((1, E), buffers),                   # ln2 beta
            ],
            out_specs=[
                pl.BlockSpec((B, S, E), lambda n: (n, 0, 0)),   # out
                pl.BlockSpec((B, S, S), lambda n: (n, 0, 0)),   # attention weights
            ],
        )
        return pl.pallas_call(
            kernel,
            out_shape=(
                jax.ShapeDtypeStruct((N, S, E), jnp.float32),
                jax.ShapeDtypeStruct((N, S, S), attn_dtype),
            ),
            grid_spec=grid_spec,
            compiler_params=compiler_params,
            cost_estimate=cost,
        )

    args = (x,
            wq, wk, wv, wo, params["bo"],
            params["ln1_g"], params["ln1_b"],
            w1, params["b1"], w2, params["b2"],
            params["ln2_g"], params["ln2_b"])

    if weight_buffers is not None and weight_buffers != 2:
        try:
            return build(weight_buffers)(*args)
        except Exception:
            # Fallback for JAX builds that reject pipeline_mode=pl.Buffered(1);
            # default double-buffering is correct, just uses ~2x weight VMEM.
            pass
    return build(None)(*args)


def init_params(key, embed_size, hidden):
    ks = jax.random.split(key, 8)
    scale = 0.05
    E, Hf = embed_size, hidden
    # Weights stored already transposed to (in, out) so the kernel does x @ W.
    return {
        "wq": scale * jax.random.normal(ks[0], (E, E), jnp.float32),
        "wk": scale * jax.random.normal(ks[1], (E, E), jnp.float32),
        "wv": scale * jax.random.normal(ks[2], (E, E), jnp.float32),
        "wo": scale * jax.random.normal(ks[3], (E, E), jnp.float32),
        "bo": scale * jax.random.normal(ks[4], (1, E), jnp.float32),
        "ln1_g": jnp.ones((1, E), jnp.float32),
        "ln1_b": jnp.zeros((1, E), jnp.float32),
        "w1": scale * jax.random.normal(ks[5], (E, Hf), jnp.float32),
        "b1": scale * jax.random.normal(ks[6], (1, Hf), jnp.float32),
        "w2": scale * jax.random.normal(ks[7], (Hf, E), jnp.float32),
        "b2": jnp.zeros((1, E), jnp.float32),
        "ln2_g": jnp.ones((1, E), jnp.float32),
        "ln2_b": jnp.zeros((1, E), jnp.float32),
    }


def encoder_reference(x, p):
    """Pure-JAX reference mirroring the PyTorch forward (heads=1, dropout=0)."""
    def ln(v, g, b):
        m = jnp.mean(v, axis=-1, keepdims=True)
        var = jnp.mean((v - m) ** 2, axis=-1, keepdims=True)
        return (v - m) / jnp.sqrt(var + LN_EPS) * g + b

    E = x.shape[-1]
    q = x @ p["wq"]; k = x @ p["wk"]; v = x @ p["wv"]
    energy = jnp.einsum("nqe,nke->nqk", q, k) / math.sqrt(E)
    attn = jax.nn.softmax(energy, axis=-1)
    ctx = jnp.einsum("nqk,nke->nqe", attn, v)
    o = ctx @ p["wo"] + p["bo"]
    y1 = ln(o + x, p["ln1_g"], p["ln1_b"])
    h = jax.nn.relu(y1 @ p["w1"] + p["b1"])
    f = h @ p["w2"] + p["b2"]
    y2 = ln(f + y1, p["ln2_g"], p["ln2_b"])
    return y2, attn


if __name__ == "__main__":
    N, S, E, HIDDEN = 2, 8, 32, 64   # batch, seq, embed_size, ffn hidden; heads = 1
    key = jax.random.PRNGKey(0)
    kx, kp = jax.random.split(key)
    x = jax.random.normal(kx, (N, S, E), jnp.float32)
    params = init_params(kp, E, HIDDEN)
    ref_out, ref_attn = encoder_reference(x, params)

    # f32 path: exact softmax divide, parity with the PyTorch reference.
    out, attn = encoder_forward(x, params)
    out = jax.block_until_ready(out)
    attn = jax.block_until_ready(attn)
    assert out.shape == (N, S, E) and attn.shape == (N, S, S)
    assert jnp.allclose(out, ref_out, atol=5e-3, rtol=5e-3)
    assert jnp.allclose(attn, ref_attn, atol=5e-3, rtol=5e-3)

    # bf16 MXU operands + bf16 attention writeback, f32 accumulation
    # (v6e/v7x fast path) -- looser check.
    out_bf, attn_bf = encoder_forward(x, params, matmul_dtype=jnp.bfloat16,
                                      attn_dtype=jnp.bfloat16)
    out_bf = jax.block_until_ready(out_bf)
    attn_bf = jax.block_until_ready(attn_bf)
    assert bool(jnp.all(jnp.isfinite(out_bf)))
    assert jnp.allclose(out_bf, ref_out, atol=1e-1, rtol=1e-1)
    assert jnp.allclose(attn_bf.astype(jnp.float32), ref_attn, atol=1e-1, rtol=1e-1)

    print("KERNEL_OK")
</pallas_src>

<mosaic_0001>
module attributes {stable_mosaic.version = 11 : i64} {
  func.func @encoder_kernel(%arg0: i32, %arg1: memref<1x8x32xf32, #tpu.memory_space<vmem>>, %arg2: memref<32x32xf32, #tpu.memory_space<vmem>>, %arg3: memref<32x32xf32, #tpu.memory_space<vmem>>, %arg4: memref<32x32xf32, #tpu.memory_space<vmem>>, %arg5: memref<32x32xf32, #tpu.memory_space<vmem>>, %arg6: memref<1x32xf32, #tpu.memory_space<vmem>>, %arg7: memref<1x32xf32, #tpu.memory_space<vmem>>, %arg8: memref<1x32xf32, #tpu.memory_space<vmem>>, %arg9: memref<32x64xf32, #tpu.memory_space<vmem>>, %arg10: memref<1x64xf32, #tpu.memory_space<vmem>>, %arg11: memref<64x32xf32, #tpu.memory_space<vmem>>, %arg12: memref<1x32xf32, #tpu.memory_space<vmem>>, %arg13: memref<1x32xf32, #tpu.memory_space<vmem>>, %arg14: memref<1x32xf32, #tpu.memory_space<vmem>>, %arg15: memref<1x8x32xf32, #tpu.memory_space<vmem>>, %arg16: memref<1x8x8xf32, #tpu.memory_space<vmem>>) attributes {dimension_semantics = [#tpu.dimension_semantics<parallel>], iteration_bounds = array<i64: 2>, scalar_prefetch = 0 : i64, scratch_operands = 0 : i64, tpu.core_type = #tpu.core_type<tc>, window_params = [{transform_indices = @transform_0, window_bounds = array<i64: 1, 8, 32>}, {pipeline_mode = #tpu.pipeline_mode<synchronous>, transform_indices = @transform_1, window_bounds = array<i64: 32, 32>}, {pipeline_mode = #tpu.pipeline_mode<synchronous>, transform_indices = @transform_2, window_bounds = array<i64: 32, 32>}, {pipeline_mode = #tpu.pipeline_mode<synchronous>, transform_indices = @transform_3, window_bounds = array<i64: 32, 32>}, {pipeline_mode = #tpu.pipeline_mode<synchronous>, transform_indices = @transform_4, window_bounds = array<i64: 32, 32>}, {pipeline_mode = #tpu.pipeline_mode<synchronous>, transform_indices = @transform_5, window_bounds = array<i64: 1, 32>}, {pipeline_mode = #tpu.pipeline_mode<synchronous>, transform_indices = @transform_6, window_bounds = array<i64: 1, 32>}, {pipeline_mode = #tpu.pipeline_mode<synchronous>, transform_indices = @transform_7, window_bounds = array<i64: 1, 32>}, {pipeline_mode = #tpu.pipeline_mode<synchronous>, transform_indices = @transform_8, window_bounds = array<i64: 32, 64>}, {pipeline_mode = #tpu.pipeline_mode<synchronous>, transform_indices = @transform_9, window_bounds = array<i64: 1, 64>}, {pipeline_mode = #tpu.pipeline_mode<synchronous>, transform_indices = @transform_10, window_bounds = array<i64: 64, 32>}, {pipeline_mode = #tpu.pipeline_mode<synchronous>, transform_indices = @transform_11, window_bounds = array<i64: 1, 32>}, {pipeline_mode = #tpu.pipeline_mode<synchronous>, transform_indices = @transform_12, window_bounds = array<i64: 1, 32>}, {pipeline_mode = #tpu.pipeline_mode<synchronous>, transform_indices = @transform_13, window_bounds = array<i64: 1, 32>}, {transform_indices = @transform_14, window_bounds = array<i64: 1, 8, 32>}, {transform_indices = @transform_15, window_bounds = array<i64: 1, 8, 8>}]} {
    %c0 = arith.constant 0 : index
    %c0_0 = arith.constant 0 : index
    %c0_1 = arith.constant 0 : index
    %0 = vector.load %arg1[%c0, %c0_0, %c0_1] : memref<1x8x32xf32, #tpu.memory_space<vmem>>, vector<1x8x32xf32>
    %1 = vector.shape_cast %0 : vector<1x8x32xf32> to vector<8x32xf32>
    %c0_2 = arith.constant 0 : index
    %c0_3 = arith.constant 0 : index
    %2 = vector.load %arg2[%c0_2, %c0_3] : memref<32x32xf32, #tpu.memory_space<vmem>>, vector<32x32xf32>
    %cst = arith.constant dense<0.000000e+00> : vector<8x32xf32>
    %3 = tpu.matmul %1, %2, %cst {dimension_numbers = #tpu.dot_dimension_numbers<[1], [0], [0], [1], [0, 0, 1, 1], [], []>} : vector<8x32xf32>, vector<32x32xf32>, vector<8x32xf32> -> vector<8x32xf32>
    %cst_4 = arith.constant 0.176776692 : f32
    %4 = vector.broadcast %cst_4 : f32 to vector<8x32xf32>
    %5 = arith.mulf %3, %4 : vector<8x32xf32>
    %c0_5 = arith.constant 0 : index
    %c0_6 = arith.constant 0 : index
    %6 = vector.load %arg3[%c0_5, %c0_6] : memref<32x32xf32, #tpu.memory_space<vmem>>, vector<32x32xf32>
    %cst_7 = arith.constant dense<0.000000e+00> : vector<8x32xf32>
    %7 = tpu.matmul %1, %6, %cst_7 {dimension_numbers = #tpu.dot_dimension_numbers<[1], [0], [0], [1], [0, 0, 1, 1], [], []>} : vector<8x32xf32>, vector<32x32xf32>, vector<8x32xf32> -> vector<8x32xf32>
    %c0_8 = arith.constant 0 : index
    %c0_9 = arith.constant 0 : index
    %8 = vector.load %arg4[%c0_8, %c0_9] : memref<32x32xf32, #tpu.memory_space<vmem>>, vector<32x32xf32>
    %cst_10 = arith.constant dense<0.000000e+00> : vector<8x32xf32>
    %9 = tpu.matmul %1, %8, %cst_10 {dimension_numbers = #tpu.dot_dimension_numbers<[1], [0], [0], [1], [0, 0, 1, 1], [], []>} : vector<8x32xf32>, vector<32x32xf32>, vector<8x32xf32> -> vector<8x32xf32>
    %10 = vector.shape_cast %5 : vector<8x32xf32> to vector<1x8x32xf32>
    %11 = vector.shape_cast %7 : vector<8x32xf32> to vector<1x8x32xf32>
    %12 = vector.shape_cast %9 : vector<8x32xf32> to vector<1x8x32xf32>
    "tpu.trace_start"() <{level = 10 : i32, message = "bqe,bke->bqk"}> : () -> ()
    %cst_11 = arith.constant dense<0.000000e+00> : vector<1x8x8xf32>
    %13 = tpu.matmul %10, %11, %cst_11 {dimension_numbers = #tpu.dot_dimension_numbers<[2], [2], [1], [1], [0, 0, 0, 1, 1, 1], [0], [0]>} : vector<1x8x32xf32>, vector<1x8x32xf32>, vector<1x8x8xf32> -> vector<1x8x8xf32>
    "tpu.trace_stop"() : () -> ()
    %cst_12 = arith.constant dense<0xFF800000> : vector<1x8xf32>
    %14 = vector.multi_reduction <maximumf>, %13, %cst_12 [2] : vector<1x8x8xf32> to vector<1x8xf32>
    %15 = vector.shape_cast %14 : vector<1x8xf32> to vector<1x8x1xf32>
    %16 = vector.broadcast %15 : vector<1x8x1xf32> to vector<1x8x8xf32>
    %17 = arith.subf %13, %16 : vector<1x8x8xf32>
    %18 = math.exp %17 : vector<1x8x8xf32>
    %cst_13 = arith.constant dense<0.000000e+00> : vector<1x8xf32>
    %19 = vector.multi_reduction <add>, %18, %cst_13 [2] : vector<1x8x8xf32> to vector<1x8xf32>
    %20 = vector.shape_cast %19 : vector<1x8xf32> to vector<1x8x1xf32>
    %21 = vector.broadcast %20 : vector<1x8x1xf32> to vector<1x8x8xf32>
    %22 = arith.divf %18, %21 : vector<1x8x8xf32>
    "tpu.trace_start"() <{level = 10 : i32, message = "bqk,bke->bqe"}> : () -> ()
    %cst_14 = arith.constant dense<0.000000e+00> : vector<1x8x32xf32>
    %23 = tpu.matmul %22, %12, %cst_14 {dimension_numbers = #tpu.dot_dimension_numbers<[2], [1], [1], [2], [0, 0, 0, 1, 1, 2], [0], [0]>} : vector<1x8x8xf32>, vector<1x8x32xf32>, vector<1x8x32xf32> -> vector<1x8x32xf32>
    "tpu.trace_stop"() : () -> ()
    %24 = vector.shape_cast %23 : vector<1x8x32xf32> to vector<8x32xf32>
    %c0_15 = arith.constant 0 : index
    %c0_16 = arith.constant 0 : index
    %25 = vector.load %arg5[%c0_15, %c0_16] : memref<32x32xf32, #tpu.memory_space<vmem>>, vector<32x32xf32>
    %cst_17 = arith.constant dense<0.000000e+00> : vector<8x32xf32>
    %26 = tpu.matmul %24, %25, %cst_17 {dimension_numbers = #tpu.dot_dimension_numbers<[1], [0], [0], [1], [0, 0, 1, 1], [], []>} : vector<8x32xf32>, vector<32x32xf32>, vector<8x32xf32> -> vector<8x32xf32>
    %c0_18 = arith.constant 0 : index
    %c0_19 = arith.constant 0 : index
    %27 = vector.load %arg6[%c0_18, %c0_19] : memref<1x32xf32, #tpu.memory_space<vmem>>, vector<1x32xf32>
    %28 = vector.broadcast %27 : vector<1x32xf32> to vector<8x32xf32>
    %29 = arith.addf %26, %28 : vector<8x32xf32>
    %30 = arith.addf %29, %1 : vector<8x32xf32>
    %c0_20 = arith.constant 0 : index
    %c0_21 = arith.constant 0 : index
    %31 = vector.load %arg7[%c0_20, %c0_21] : memref<1x32xf32, #tpu.memory_space<vmem>>, vector<1x32xf32>
    %c0_22 = arith.constant 0 : index
    %c0_23 = arith.constant 0 : index
    %32 = vector.load %arg8[%c0_22, %c0_23] : memref<1x32xf32, #tpu.memory_space<vmem>>, vector<1x32xf32>
    %cst_24 = arith.constant dense<0.000000e+00> : vector<8xf32>
    %33 = vector.multi_reduction <add>, %30, %cst_24 [1] : vector<8x32xf32> to vector<8xf32>
    %34 = vector.shape_cast %33 : vector<8xf32> to vector<8x1xf32>
    %cst_25 = arith.constant 3.200000e+01 : f32
    %35 = vector.broadcast %cst_25 : f32 to vector<8x1xf32>
    %36 = arith.divf %34, %35 : vector<8x1xf32>
    %37 = vector.broadcast %36 : vector<8x1xf32> to vector<8x32xf32>
    %38 = arith.subf %30, %37 : vector<8x32xf32>
    %39 = arith.mulf %38, %38 : vector<8x32xf32>
    %cst_26 = arith.constant dense<0.000000e+00> : vector<8xf32>
    %40 = vector.multi_reduction <add>, %39, %cst_26 [1] : vector<8x32xf32> to vector<8xf32>
    %41 = vector.shape_cast %40 : vector<8xf32> to vector<8x1xf32>
    %cst_27 = arith.constant 3.200000e+01 : f32
    %42 = vector.broadcast %cst_27 : f32 to vector<8x1xf32>
    %43 = arith.divf %41, %42 : vector<8x1xf32>
    %cst_28 = arith.constant 9.99999974E-6 : f32
    %44 = vector.broadcast %cst_28 : f32 to vector<8x1xf32>
    %45 = arith.addf %43, %44 : vector<8x1xf32>
    %46 = math.rsqrt %45 : vector<8x1xf32>
    %47 = vector.broadcast %36 : vector<8x1xf32> to vector<8x32xf32>
    %48 = arith.subf %30, %47 : vector<8x32xf32>
    %49 = vector.broadcast %46 : vector<8x1xf32> to vector<8x32xf32>
    %50 = arith.mulf %48, %49 : vector<8x32xf32>
    %51 = vector.broadcast %31 : vector<1x32xf32> to vector<8x32xf32>
    %52 = arith.mulf %50, %51 : vector<8x32xf32>
    %53 = vector.broadcast %32 : vector<1x32xf32> to vector<8x32xf32>
    %54 = arith.addf %52, %53 : vector<8x32xf32>
    %c0_29 = arith.constant 0 : index
    %c0_30 = arith.constant 0 : index
    %55 = vector.load %arg9[%c0_29, %c0_30] : memref<32x64xf32, #tpu.memory_space<vmem>>, vector<32x64xf32>
    %cst_31 = arith.constant dense<0.000000e+00> : vector<8x64xf32>
    %56 = tpu.matmul %54, %55, %cst_31 {dimension_numbers = #tpu.dot_dimension_numbers<[1], [0], [0], [1], [0, 0, 1, 1], [], []>} : vector<8x32xf32>, vector<32x64xf32>, vector<8x64xf32> -> vector<8x64xf32>
    %c0_32 = arith.constant 0 : index
    %c0_33 = arith.constant 0 : index
    %57 = vector.load %arg10[%c0_32, %c0_33] : memref<1x64xf32, #tpu.memory_space<vmem>>, vector<1x64xf32>
    %58 = vector.broadcast %57 : vector<1x64xf32> to vector<8x64xf32>
    %59 = arith.addf %56, %58 : vector<8x64xf32>
    %cst_34 = arith.constant 0.000000e+00 : f32
    %60 = vector.broadcast %cst_34 : f32 to vector<8x64xf32>
    %61 = arith.maximumf %59, %60 : vector<8x64xf32>
    %c0_35 = arith.constant 0 : index
    %c0_36 = arith.constant 0 : index
    %62 = vector.load %arg11[%c0_35, %c0_36] : memref<64x32xf32, #tpu.memory_space<vmem>>, vector<64x32xf32>
    %cst_37 = arith.constant dense<0.000000e+00> : vector<8x32xf32>
    %63 = tpu.matmul %61, %62, %cst_37 {dimension_numbers = #tpu.dot_dimension_numbers<[1], [0], [0], [1], [0, 0, 1, 1], [], []>} : vector<8x64xf32>, vector<64x32xf32>, vector<8x32xf32> -> vector<8x32xf32>
    %c0_38 = arith.constant 0 : index
    %c0_39 = arith.constant 0 : index
    %64 = vector.load %arg12[%c0_38, %c0_39] : memref<1x32xf32, #tpu.memory_space<vmem>>, vector<1x32xf32>
    %65 = vector.broadcast %64 : vector<1x32xf32> to vector<8x32xf32>
    %66 = arith.addf %63, %65 : vector<8x32xf32>
    %67 = arith.addf %66, %54 : vector<8x32xf32>
    %c0_40 = arith.constant 0 : index
    %c0_41 = arith.constant 0 : index
    %68 = vector.load %arg13[%c0_40, %c0_41] : memref<1x32xf32, #tpu.memory_space<vmem>>, vector<1x32xf32>
    %c0_42 = arith.constant 0 : index
    %c0_43 = arith.constant 0 : index
    %69 = vector.load %arg14[%c0_42, %c0_43] : memref<1x32xf32, #tpu.memory_space<vmem>>, vector<1x32xf32>
    %cst_44 = arith.constant dense<0.000000e+00> : vector<8xf32>
    %70 = vector.multi_reduction <add>, %67, %cst_44 [1] : vector<8x32xf32> to vector<8xf32>
    %71 = vector.shape_cast %70 : vector<8xf32> to vector<8x1xf32>
    %cst_45 = arith.constant 3.200000e+01 : f32
    %72 = vector.broadcast %cst_45 : f32 to vector<8x1xf32>
    %73 = arith.divf %71, %72 : vector<8x1xf32>
    %74 = vector.broadcast %73 : vector<8x1xf32> to vector<8x32xf32>
    %75 = arith.subf %67, %74 : vector<8x32xf32>
    %76 = arith.mulf %75, %75 : vector<8x32xf32>
    %cst_46 = arith.constant dense<0.000000e+00> : vector<8xf32>
    %77 = vector.multi_reduction <add>, %76, %cst_46 [1] : vector<8x32xf32> to vector<8xf32>
    %78 = vector.shape_cast %77 : vector<8xf32> to vector<8x1xf32>
    %cst_47 = arith.constant 3.200000e+01 : f32
    %79 = vector.broadcast %cst_47 : f32 to vector<8x1xf32>
    %80 = arith.divf %78, %79 : vector<8x1xf32>
    %cst_48 = arith.constant 9.99999974E-6 : f32
    %81 = vector.broadcast %cst_48 : f32 to vector<8x1xf32>
    %82 = arith.addf %80, %81 : vector<8x1xf32>
    %83 = math.rsqrt %82 : vector<8x1xf32>
    %84 = vector.broadcast %73 : vector<8x1xf32> to vector<8x32xf32>
    %85 = arith.subf %67, %84 : vector<8x32xf32>
    %86 = vector.broadcast %83 : vector<8x1xf32> to vector<8x32xf32>
    %87 = arith.mulf %85, %86 : vector<8x32xf32>
    %88 = vector.broadcast %68 : vector<1x32xf32> to vector<8x32xf32>
    %89 = arith.mulf %87, %88 : vector<8x32xf32>
    %90 = vector.broadcast %69 : vector<1x32xf32> to vector<8x32xf32>
    %91 = arith.addf %89, %90 : vector<8x32xf32>
    %92 = vector.shape_cast %91 : vector<8x32xf32> to vector<1x8x32xf32>
    %c0_49 = arith.constant 0 : index
    %c0_50 = arith.constant 0 : index
    %c0_51 = arith.constant 0 : index
    %93 = vector.load %arg15[%c0_49, %c0_50, %c0_51] : memref<1x8x32xf32, #tpu.memory_space<vmem>>, vector<1x8x32xf32>
    tpu.vector_store %arg15[%c0_49, %c0_50, %c0_51], %92 {strides = array<i32>} : memref<1x8x32xf32, #tpu.memory_space<vmem>>, vector<1x8x32xf32>,
    %c0_52 = arith.constant 0 : index
    %c0_53 = arith.constant 0 : index
    %c0_54 = arith.constant 0 : index
    %94 = vector.load %arg16[%c0_52, %c0_53, %c0_54] : memref<1x8x8xf32, #tpu.memory_space<vmem>>, vector<1x8x8xf32>
    tpu.vector_store %arg16[%c0_52, %c0_53, %c0_54], %22 {strides = array<i32>} : memref<1x8x8xf32, #tpu.memory_space<vmem>>, vector<1x8x8xf32>,
    return
  }
  func.func @transform_0(%arg0: i32) -> (i32, i32, i32) {
    %c0_i32 = arith.constant 0 : i32
    %c0_i32_0 = arith.constant 0 : i32
    %c0_i32_1 = arith.constant 0 : i32
    return %arg0, %c0_i32, %c0_i32_0 : i32, i32, i32
  }
  func.func @transform_1(%arg0: i32) -> (i32, i32) {
    %c0_i32 = arith.constant 0 : i32
    %c0_i32_0 = arith.constant 0 : i32
    %c0_i32_1 = arith.constant 0 : i32
    return %c0_i32, %c0_i32_0 : i32, i32
  }
  func.func @transform_2(%arg0: i32) -> (i32, i32) {
    %c0_i32 = arith.constant 0 : i32
    %c0_i32_0 = arith.constant 0 : i32
    %c0_i32_1 = arith.constant 0 : i32
    return %c0_i32, %c0_i32_0 : i32, i32
  }
  func.func @transform_3(%arg0: i32) -> (i32, i32) {
    %c0_i32 = arith.constant 0 : i32
    %c0_i32_0 = arith.constant 0 : i32
    %c0_i32_1 = arith.constant 0 : i32
    return %c0_i32, %c0_i32_0 : i32, i32
  }
  func.func @transform_4(%arg0: i32) -> (i32, i32) {
    %c0_i32 = arith.constant 0 : i32
    %c0_i32_0 = arith.constant 0 : i32
    %c0_i32_1 = arith.constant 0 : i32
    return %c0_i32, %c0_i32_0 : i32, i32
  }
  func.func @transform_5(%arg0: i32) -> (i32, i32) {
    %c0_i32 = arith.constant 0 : i32
    %c0_i32_0 = arith.constant 0 : i32
    %c0_i32_1 = arith.constant 0 : i32
    return %c0_i32, %c0_i32_0 : i32, i32
  }
  func.func @transform_6(%arg0: i32) -> (i32, i32) {
    %c0_i32 = arith.constant 0 : i32
    %c0_i32_0 = arith.constant 0 : i32
    %c0_i32_1 = arith.constant 0 : i32
    return %c0_i32, %c0_i32_0 : i32, i32
  }
  func.func @transform_7(%arg0: i32) -> (i32, i32) {
    %c0_i32 = arith.constant 0 : i32
    %c0_i32_0 = arith.constant 0 : i32
    %c0_i32_1 = arith.constant 0 : i32
    return %c0_i32, %c0_i32_0 : i32, i32
  }
  func.func @transform_8(%arg0: i32) -> (i32, i32) {
    %c0_i32 = arith.constant 0 : i32
    %c0_i32_0 = arith.constant 0 : i32
    %c0_i32_1 = arith.constant 0 : i32
    return %c0_i32, %c0_i32_0 : i32, i32
  }
  func.func @transform_9(%arg0: i32) -> (i32, i32) {
    %c0_i32 = arith.constant 0 : i32
    %c0_i32_0 = arith.constant 0 : i32
    %c0_i32_1 = arith.constant 0 : i32
    return %c0_i32, %c0_i32_0 : i32, i32
  }
  func.func @transform_10(%arg0: i32) -> (i32, i32) {
    %c0_i32 = arith.constant 0 : i32
    %c0_i32_0 = arith.constant 0 : i32
    %c0_i32_1 = arith.constant 0 : i32
    return %c0_i32, %c0_i32_0 : i32, i32
  }
  func.func @transform_11(%arg0: i32) -> (i32, i32) {
    %c0_i32 = arith.constant 0 : i32
    %c0_i32_0 = arith.constant 0 : i32
    %c0_i32_1 = arith.constant 0 : i32
    return %c0_i32, %c0_i32_0 : i32, i32
  }
  func.func @transform_12(%arg0: i32) -> (i32, i32) {
    %c0_i32 = arith.constant 0 : i32
    %c0_i32_0 = arith.constant 0 : i32
    %c0_i32_1 = arith.constant 0 : i32
    return %c0_i32, %c0_i32_0 : i32, i32
  }
  func.func @transform_13(%arg0: i32) -> (i32, i32) {
    %c0_i32 = arith.constant 0 : i32
    %c0_i32_0 = arith.constant 0 : i32
    %c0_i32_1 = arith.constant 0 : i32
    return %c0_i32, %c0_i32_0 : i32, i32
  }
  func.func @transform_14(%arg0: i32) -> (i32, i32, i32) {
    %c0_i32 = arith.constant 0 : i32
    %c0_i32_0 = arith.constant 0 : i32
    %c0_i32_1 = arith.constant 0 : i32
    return %arg0, %c0_i32, %c0_i32_0 : i32, i32, i32
  }
  func.func @transform_15(%arg0: i32) -> (i32, i32, i32) {
    %c0_i32 = arith.constant 0 : i32
    %c0_i32_0 = arith.constant 0 : i32
    %c0_i32_1 = arith.constant 0 : i32
    return %arg0, %c0_i32, %c0_i32_0 : i32, i32, i32
  }
}

module attributes {stable_mosaic.version = 11 : i64} {
  func.func @encoder_kernel(%arg0: i32, %arg1: memref<1x8x32xf32, #tpu.memory_space<vmem>>, %arg2: memref<32x32xf32, #tpu.memory_space<vmem>>, %arg3: memref<32x32xf32, #tpu.memory_space<vmem>>, %arg4: memref<32x32xf32, #tpu.memory_space<vmem>>, %arg5: memref<32x32xf32, #tpu.memory_space<vmem>>, %arg6: memref<1x32xf32, #tpu.memory_space<vmem>>, %arg7: memref<1x32xf32, #tpu.memory_space<vmem>>, %arg8: memref<1x32xf32, #tpu.memory_space<vmem>>, %arg9: memref<32x64xf32, #tpu.memory_space<vmem>>, %arg10: memref<1x64xf32, #tpu.memory_space<vmem>>, %arg11: memref<64x32xf32, #tpu.memory_space<vmem>>, %arg12: memref<1x32xf32, #tpu.memory_space<vmem>>, %arg13: memref<1x32xf32, #tpu.memory_space<vmem>>, %arg14: memref<1x32xf32, #tpu.memory_space<vmem>>, %arg15: memref<1x8x32xf32, #tpu.memory_space<vmem>>, %arg16: memref<1x8x8xf32, #tpu.memory_space<vmem>>) attributes {dimension_semantics = [#tpu.dimension_semantics<parallel>], iteration_bounds = array<i64: 2>, scalar_prefetch = 0 : i64, scratch_operands = 0 : i64, tpu.core_type = #tpu.core_type<tc>, window_params = [{transform_indices = @transform_0, window_bounds = array<i64: 1, 8, 32>}, {pipeline_mode = #tpu.pipeline_mode<synchronous>, transform_indices = @transform_1, window_bounds = array<i64: 32, 32>}, {pipeline_mode = #tpu.pipeline_mode<synchronous>, transform_indices = @transform_2, window_bounds = array<i64: 32, 32>}, {pipeline_mode = #tpu.pipeline_mode<synchronous>, transform_indices = @transform_3, window_bounds = array<i64: 32, 32>}, {pipeline_mode = #tpu.pipeline_mode<synchronous>, transform_indices = @transform_4, window_bounds = array<i64: 32, 32>}, {pipeline_mode = #tpu.pipeline_mode<synchronous>, transform_indices = @transform_5, window_bounds = array<i64: 1, 32>}, {pipeline_mode = #tpu.pipeline_mode<synchronous>, transform_indices = @transform_6, window_bounds = array<i64: 1, 32>}, {pipeline_mode = #tpu.pipeline_mode<synchronous>, transform_indices = @transform_7, window_bounds = array<i64: 1, 32>}, {pipeline_mode = #tpu.pipeline_mode<synchronous>, transform_indices = @transform_8, window_bounds = array<i64: 32, 64>}, {pipeline_mode = #tpu.pipeline_mode<synchronous>, transform_indices = @transform_9, window_bounds = array<i64: 1, 64>}, {pipeline_mode = #tpu.pipeline_mode<synchronous>, transform_indices = @transform_10, window_bounds = array<i64: 64, 32>}, {pipeline_mode = #tpu.pipeline_mode<synchronous>, transform_indices = @transform_11, window_bounds = array<i64: 1, 32>}, {pipeline_mode = #tpu.pipeline_mode<synchronous>, transform_indices = @transform_12, window_bounds = array<i64: 1, 32>}, {pipeline_mode = #tpu.pipeline_mode<synchronous>, transform_indices = @transform_13, window_bounds = array<i64: 1, 32>}, {transform_indices = @transform_14, window_bounds = array<i64: 1, 8, 32>}, {transform_indices = @transform_15, window_bounds = array<i64: 1, 8, 8>}]} {
    %c0 = arith.constant 0 : index
    %c0_0 = arith.constant 0 : index
    %c0_1 = arith.constant 0 : index
    %0 = vector.load %arg1[%c0, %c0_0, %c0_1] : memref<1x8x32xf32, #tpu.memory_space<vmem>>, vector<1x8x32xf32>
    %1 = vector.shape_cast %0 : vector<1x8x32xf32> to vector<8x32xf32>
    %c0_2 = arith.constant 0 : index
    %c0_3 = arith.constant 0 : index
    %2 = vector.load %arg2[%c0_2, %c0_3] : memref<32x32xf32, #tpu.memory_space<vmem>>, vector<32x32xf32>
    %cst = arith.constant dense<0.000000e+00> : vector<8x32xf32>
    %3 = tpu.matmul %1, %2, %cst {dimension_numbers = #tpu.dot_dimension_numbers<[1], [0], [0], [1], [0, 0, 1, 1], [], []>} : vector<8x32xf32>, vector<32x32xf32>, vector<8x32xf32> -> vector<8x32xf32>
    %cst_4 = arith.constant 0.176776692 : f32
    %4 = vector.broadcast %cst_4 : f32 to vector<8x32xf32>
    %5 = arith.mulf %3, %4 : vector<8x32xf32>
    %c0_5 = arith.constant 0 : index
    %c0_6 = arith.constant 0 : index
    %6 = vector.load %arg3[%c0_5, %c0_6] : memref<32x32xf32, #tpu.memory_space<vmem>>, vector<32x32xf32>
    %cst_7 = arith.constant dense<0.000000e+00> : vector<8x32xf32>
    %7 = tpu.matmul %1, %6, %cst_7 {dimension_numbers = #tpu.dot_dimension_numbers<[1], [0], [0], [1], [0, 0, 1, 1], [], []>} : vector<8x32xf32>, vector<32x32xf32>, vector<8x32xf32> -> vector<8x32xf32>
    %c0_8 = arith.constant 0 : index
    %c0_9 = arith.constant 0 : index
    %8 = vector.load %arg4[%c0_8, %c0_9] : memref<32x32xf32, #tpu.memory_space<vmem>>, vector<32x32xf32>
    %cst_10 = arith.constant dense<0.000000e+00> : vector<8x32xf32>
    %9 = tpu.matmul %1, %8, %cst_10 {dimension_numbers = #tpu.dot_dimension_numbers<[1], [0], [0], [1], [0, 0, 1, 1], [], []>} : vector<8x32xf32>, vector<32x32xf32>, vector<8x32xf32> -> vector<8x32xf32>
    %10 = vector.shape_cast %5 : vector<8x32xf32> to vector<1x8x32xf32>
    %11 = vector.shape_cast %7 : vector<8x32xf32> to vector<1x8x32xf32>
    %12 = vector.shape_cast %9 : vector<8x32xf32> to vector<1x8x32xf32>
    "tpu.trace_start"() <{level = 10 : i32, message = "bqe,bke->bqk"}> : () -> ()
    %cst_11 = arith.constant dense<0.000000e+00> : vector<1x8x8xf32>
    %13 = tpu.matmul %10, %11, %cst_11 {dimension_numbers = #tpu.dot_dimension_numbers<[2], [2], [1], [1], [0, 0, 0, 1, 1, 1], [0], [0]>} : vector<1x8x32xf32>, vector<1x8x32xf32>, vector<1x8x8xf32> -> vector<1x8x8xf32>
    "tpu.trace_stop"() : () -> ()
    %cst_12 = arith.constant dense<0xFF800000> : vector<1x8xf32>
    %14 = vector.multi_reduction <maximumf>, %13, %cst_12 [2] : vector<1x8x8xf32> to vector<1x8xf32>
    %15 = vector.shape_cast %14 : vector<1x8xf32> to vector<1x8x1xf32>
    %16 = vector.broadcast %15 : vector<1x8x1xf32> to vector<1x8x8xf32>
    %17 = arith.subf %13, %16 : vector<1x8x8xf32>
    %18 = math.exp %17 : vector<1x8x8xf32>
    %cst_13 = arith.constant dense<0.000000e+00> : vector<1x8xf32>
    %19 = vector.multi_reduction <add>, %18, %cst_13 [2] : vector<1x8x8xf32> to vector<1x8xf32>
    %20 = vector.shape_cast %19 : vector<1x8xf32> to vector<1x8x1xf32>
    %21 = vector.broadcast %20 : vector<1x8x1xf32> to vector<1x8x8xf32>
    %22 = arith.divf %18, %21 : vector<1x8x8xf32>
    "tpu.trace_start"() <{level = 10 : i32, message = "bqk,bke->bqe"}> : () -> ()
    %cst_14 = arith.constant dense<0.000000e+00> : vector<1x8x32xf32>
    %23 = tpu.matmul %22, %12, %cst_14 {dimension_numbers = #tpu.dot_dimension_numbers<[2], [1], [1], [2], [0, 0, 0, 1, 1, 2], [0], [0]>} : vector<1x8x8xf32>, vector<1x8x32xf32>, vector<1x8x32xf32> -> vector<1x8x32xf32>
    "tpu.trace_stop"() : () -> ()
    %24 = vector.shape_cast %23 : vector<1x8x32xf32> to vector<8x32xf32>
    %c0_15 = arith.constant 0 : index
    %c0_16 = arith.constant 0 : index
    %25 = vector.load %arg5[%c0_15, %c0_16] : memref<32x32xf32, #tpu.memory_space<vmem>>, vector<32x32xf32>
    %cst_17 = arith.constant dense<0.000000e+00> : vector<8x32xf32>
    %26 = tpu.matmul %24, %25, %cst_17 {dimension_numbers = #tpu.dot_dimension_numbers<[1], [0], [0], [1], [0, 0, 1, 1], [], []>} : vector<8x32xf32>, vector<32x32xf32>, vector<8x32xf32> -> vector<8x32xf32>
    %c0_18 = arith.constant 0 : index
    %c0_19 = arith.constant 0 : index
    %27 = vector.load %arg6[%c0_18, %c0_19] : memref<1x32xf32, #tpu.memory_space<vmem>>, vector<1x32xf32>
    %28 = vector.broadcast %27 : vector<1x32xf32> to vector<8x32xf32>
    %29 = arith.addf %26, %28 : vector<8x32xf32>
    %30 = arith.addf %29, %1 : vector<8x32xf32>
    %c0_20 = arith.constant 0 : index
    %c0_21 = arith.constant 0 : index
    %31 = vector.load %arg7[%c0_20, %c0_21] : memref<1x32xf32, #tpu.memory_space<vmem>>, vector<1x32xf32>
    %c0_22 = arith.constant 0 : index
    %c0_23 = arith.constant 0 : index
    %32 = vector.load %arg8[%c0_22, %c0_23] : memref<1x32xf32, #tpu.memory_space<vmem>>, vector<1x32xf32>
    %cst_24 = arith.constant dense<0.000000e+00> : vector<8xf32>
    %33 = vector.multi_reduction <add>, %30, %cst_24 [1] : vector<8x32xf32> to vector<8xf32>
    %34 = vector.shape_cast %33 : vector<8xf32> to vector<8x1xf32>
    %cst_25 = arith.constant 3.200000e+01 : f32
    %35 = vector.broadcast %cst_25 : f32 to vector<8x1xf32>
    %36 = arith.divf %34, %35 : vector<8x1xf32>
    %37 = vector.broadcast %36 : vector<8x1xf32> to vector<8x32xf32>
    %38 = arith.subf %30, %37 : vector<8x32xf32>
    %39 = arith.mulf %38, %38 : vector<8x32xf32>
    %cst_26 = arith.constant dense<0.000000e+00> : vector<8xf32>
    %40 = vector.multi_reduction <add>, %39, %cst_26 [1] : vector<8x32xf32> to vector<8xf32>
    %41 = vector.shape_cast %40 : vector<8xf32> to vector<8x1xf32>
    %cst_27 = arith.constant 3.200000e+01 : f32
    %42 = vector.broadcast %cst_27 : f32 to vector<8x1xf32>
    %43 = arith.divf %41, %42 : vector<8x1xf32>
    %cst_28 = arith.constant 9.99999974E-6 : f32
    %44 = vector.broadcast %cst_28 : f32 to vector<8x1xf32>
    %45 = arith.addf %43, %44 : vector<8x1xf32>
    %46 = math.rsqrt %45 : vector<8x1xf32>
    %47 = vector.broadcast %36 : vector<8x1xf32> to vector<8x32xf32>
    %48 = arith.subf %30, %47 : vector<8x32xf32>
    %49 = vector.broadcast %46 : vector<8x1xf32> to vector<8x32xf32>
    %50 = arith.mulf %48, %49 : vector<8x32xf32>
    %51 = vector.broadcast %31 : vector<1x32xf32> to vector<8x32xf32>
    %52 = arith.mulf %50, %51 : vector<8x32xf32>
    %53 = vector.broadcast %32 : vector<1x32xf32> to vector<8x32xf32>
    %54 = arith.addf %52, %53 : vector<8x32xf32>
    %c0_29 = arith.constant 0 : index
    %c0_30 = arith.constant 0 : index
    %55 = vector.load %arg9[%c0_29, %c0_30] : memref<32x64xf32, #tpu.memory_space<vmem>>, vector<32x64xf32>
    %cst_31 = arith.constant dense<0.000000e+00> : vector<8x64xf32>
    %56 = tpu.matmul %54, %55, %cst_31 {dimension_numbers = #tpu.dot_dimension_numbers<[1], [0], [0], [1], [0, 0, 1, 1], [], []>} : vector<8x32xf32>, vector<32x64xf32>, vector<8x64xf32> -> vector<8x64xf32>
    %c0_32 = arith.constant 0 : index
    %c0_33 = arith.constant 0 : index
    %57 = vector.load %arg10[%c0_32, %c0_33] : memref<1x64xf32, #tpu.memory_space<vmem>>, vector<1x64xf32>
    %58 = vector.broadcast %57 : vector<1x64xf32> to vector<8x64xf32>
    %59 = arith.addf %56, %58 : vector<8x64xf32>
    %cst_34 = arith.constant 0.000000e+00 : f32
    %60 = vector.broadcast %cst_34 : f32 to vector<8x64xf32>
    %61 = arith.maximumf %59, %60 : vector<8x64xf32>
    %c0_35 = arith.constant 0 : index
    %c0_36 = arith.constant 0 : index
    %62 = vector.load %arg11[%c0_35, %c0_36] : memref<64x32xf32, #tpu.memory_space<vmem>>, vector<64x32xf32>
    %cst_37 = arith.constant dense<0.000000e+00> : vector<8x32xf32>
    %63 = tpu.matmul %61, %62, %cst_37 {dimension_numbers = #tpu.dot_dimension_numbers<[1], [0], [0], [1], [0, 0, 1, 1], [], []>} : vector<8x64xf32>, vector<64x32xf32>, vector<8x32xf32> -> vector<8x32xf32>
    %c0_38 = arith.constant 0 : index
    %c0_39 = arith.constant 0 : index
    %64 = vector.load %arg12[%c0_38, %c0_39] : memref<1x32xf32, #tpu.memory_space<vmem>>, vector<1x32xf32>
    %65 = vector.broadcast %64 : vector<1x32xf32> to vector<8x32xf32>
    %66 = arith.addf %63, %65 : vector<8x32xf32>
    %67 = arith.addf %66, %54 : vector<8x32xf32>
    %c0_40 = arith.constant 0 : index
    %c0_41 = arith.constant 0 : index
    %68 = vector.load %arg13[%c0_40, %c0_41] : memref<1x32xf32, #tpu.memory_space<vmem>>, vector<1x32xf32>
    %c0_42 = arith.constant 0 : index
    %c0_43 = arith.constant 0 : index
    %69 = vector.load %arg14[%c0_42, %c0_43] : memref<1x32xf32, #tpu.memory_space<vmem>>, vector<1x32xf32>
    %cst_44 = arith.constant dense<0.000000e+00> : vector<8xf32>
    %70 = vector.multi_reduction <add>, %67, %cst_44 [1] : vector<8x32xf32> to vector<8xf32>
    %71 = vector.shape_cast %70 : vector<8xf32> to vector<8x1xf32>
    %cst_45 = arith.constant 3.200000e+01 : f32
    %72 = vector.broadcast %cst_45 : f32 to vector<8x1xf32>
    %73 = arith.divf %71, %72 : vector<8x1xf32>
    %74 = vector.broadcast %73 : vector<8x1xf32> to vector<8x32xf32>
    %75 = arith.subf %67, %74 : vector<8x32xf32>
    %76 = arith.mulf %75, %75 : vector<8x32xf32>
    %cst_46 = arith.constant dense<0.000000e+00> : vector<8xf32>
    %77 = vector.multi_reduction <add>, %76, %cst_46 [1] : vector<8x32xf32> to vector<8xf32>
    %78 = vector.shape_cast %77 : vector<8xf32> to vector<8x1xf32>
    %cst_47 = arith.constant 3.200000e+01 : f32
    %79 = vector.broadcast %cst_47 : f32 to vector<8x1xf32>
    %80 = arith.divf %78, %79 : vector<8x1xf32>
    %cst_48 = arith.constant 9.99999974E-6 : f32
    %81 = vector.broadcast %cst_48 : f32 to vector<8x1xf32>
    %82 = arith.addf %80, %81 : vector<8x1xf32>
    %83 = math.rsqrt %82 : vector<8x1xf32>
    %84 = vector.broadcast %73 : vector<8x1xf32> to vector<8x32xf32>
    %85 = arith.subf %67, %84 : vector<8x32xf32>
    %86 = vector.broadcast %83 : vector<8x1xf32> to vector<8x32xf32>
    %87 = arith.mulf %85, %86 : vector<8x32xf32>
    %88 = vector.broadcast %68 : vector<1x32xf32> to vector<8x32xf32>
    %89 = arith.mulf %87, %88 : vector<8x32xf32>
    %90 = vector.broadcast %69 : vector<1x32xf32> to vector<8x32xf32>
    %91 = arith.addf %89, %90 : vector<8x32xf32>
    %92 = vector.shape_cast %91 : vector<8x32xf32> to vector<1x8x32xf32>
    %c0_49 = arith.constant 0 : index
    %c0_50 = arith.constant 0 : index
    %c0_51 = arith.constant 0 : index
    %93 = vector.load %arg15[%c0_49, %c0_50, %c0_51] : memref<1x8x32xf32, #tpu.memory_space<vmem>>, vector<1x8x32xf32>
    tpu.vector_store %arg15[%c0_49, %c0_50, %c0_51], %92 {strides = array<i32>} : memref<1x8x32xf32, #tpu.memory_space<vmem>>, vector<1x8x32xf32>,
    %c0_52 = arith.constant 0 : index
    %c0_53 = arith.constant 0 : index
    %c0_54 = arith.constant 0 : index
    %94 = vector.load %arg16[%c0_52, %c0_53, %c0_54] : memref<1x8x8xf32, #tpu.memory_space<vmem>>, vector<1x8x8xf32>
    tpu.vector_store %arg16[%c0_52, %c0_53, %c0_54], %22 {strides = array<i32>} : memref<1x8x8xf32, #tpu.memory_space<vmem>>, vector<1x8x8xf32>,
    return
  }
  func.func @transform_0(%arg0: i32) -> (i32, i32, i32) {
    %c0_i32 = arith.constant 0 : i32
    %c0_i32_0 = arith.constant 0 : i32
    %c0_i32_1 = arith.constant 0 : i32
    return %arg0, %c0_i32, %c0_i32_0 : i32, i32, i32
  }
  func.func @transform_1(%arg0: i32) -> (i32, i32) {
    %c0_i32 = arith.constant 0 : i32
    %c0_i32_0 = arith.constant 0 : i32
    %c0_i32_1 = arith.constant 0 : i32
    return %c0_i32, %c0_i32_0 : i32, i32
  }
  func.func @transform_2(%arg0: i32) -> (i32, i32) {
    %c0_i32 = arith.constant 0 : i32
    %c0_i32_0 = arith.constant 0 : i32
    %c0_i32_1 = arith.constant 0 : i32
    return %c0_i32, %c0_i32_0 : i32, i32
  }
  func.func @transform_3(%arg0: i32) -> (i32, i32) {
    %c0_i32 = arith.constant 0 : i32
    %c0_i32_0 = arith.constant 0 : i32
    %c0_i32_1 = arith.constant 0 : i32
    return %c0_i32, %c0_i32_0 : i32, i32
  }
  func.func @transform_4(%arg0: i32) -> (i32, i32) {
    %c0_i32 = arith.constant 0 : i32
    %c0_i32_0 = arith.constant 0 : i32
    %c0_i32_1 = arith.constant 0 : i32
    return %c0_i32, %c0_i32_0 : i32, i32
  }
  func.func @transform_5(%arg0: i32) -> (i32, i32) {
    %c0_i32 = arith.constant 0 : i32
    %c0_i32_0 = arith.constant 0 : i32
    %c0_i32_1 = arith.constant 0 : i32
    return %c0_i32, %c0_i32_0 : i32, i32
  }
  func.func @transform_6(%arg0: i32) -> (i32, i32) {
    %c0_i32 = arith.constant 0 : i32
    %c0_i32_0 = arith.constant 0 : i32
    %c0_i32_1 = arith.constant 0 : i32
    return %c0_i32, %c0_i32_0 : i32, i32
  }
  func.func @transform_7(%arg0: i32) -> (i32, i32) {
    %c0_i32 = arith.constant 0 : i32
    %c0_i32_0 = arith.constant 0 : i32
    %c0_i32_1 = arith.constant 0 : i32
    return %c0_i32, %c0_i32_0 : i32, i32
  }
  func.func @transform_8(%arg0: i32) -> (i32, i32) {
    %c0_i32 = arith.constant 0 : i32
    %c0_i32_0 = arith.constant 0 : i32
    %c0_i32_1 = arith.constant 0 : i32
    return %c0_i32, %c0_i32_0 : i32, i32
  }
  func.func @transform_9(%arg0: i32) -> (i32, i32) {
    %c0_i32 = arith.constant 0 : i32
    %c0_i32_0 = arith.constant 0 : i32
    %c0_i32_1 = arith.constant 0 : i32
    return %c0_i32, %c0_i32_0 : i32, i32
  }
  func.func @transform_10(%arg0: i32) -> (i32, i32) {
    %c0_i32 = arith.constant 0 : i32
    %c0_i32_0 = arith.constant 0 : i32
    %c0_i32_1 = arith.constant 0 : i32
    return %c0_i32, %c0_i32_0 : i32, i32
  }
  func.func @transform_11(%arg0: i32) -> (i32, i32) {
    %c0_i32 = arith.constant 0 : i32
    %c0_i32_0 = arith.constant 0 : i32
    %c0_i32_1 = arith.constant 0 : i32
    return %c0_i32, %c0_i32_0 : i32, i32
  }
  func.func @transform_12(%arg0: i32) -> (i32, i32) {
    %c0_i32 = arith.constant 0 : i32
    %c0_i32_0 = arith.constant 0 : i32
    %c0_i32_1 = arith.constant 0 : i32
    return %c0_i32, %c0_i32_0 : i32, i32
  }
  func.func @transform_13(%arg0: i32) -> (i32, i32) {
    %c0_i32 = arith.constant 0 : i32
    %c0_i32_0 = arith.constant 0 : i32
    %c0_i32_1 = arith.constant 0 : i32
    return %c0_i32, %c0_i32_0 : i32, i32
  }
  func.func @transform_14(%arg0: i32) -> (i32, i32, i32) {
    %c0_i32 = arith.constant 0 : i32
    %c0_i32_0 = arith.constant 0 : i32
    %c0_i32_1 = arith.constant 0 : i32
    return %arg0, %c0_i32, %c0_i32_0 : i32, i32, i32
  }
  func.func @transform_15(%arg0: i32) -> (i32, i32, i32) {
    %c0_i32 = arith.constant 0 : i32
    %c0_i32_0 = arith.constant 0 : i32
    %c0_i32_1 = arith.constant 0 : i32
    return %arg0, %c0_i32, %c0_i32_0 : i32, i32, i32
  }
}

</mosaic_0001>

<bundles_post_ra>
// kernel: tpu_custom_call.1
= control target key start
LH: loop header
LB: loop body
LE: loop exit
PB: predicated region body
PF: predicated region fallthrough
CT: control target
= control target key end

     0   :  { %s2377_s0 = inlined_call_operand.hbm [shape: f32[2,8,32], index: 0, kind: input, shape index: {}]   ;;  %s2378_s1 = inlined_call_operand.vmem [shape: f32[32,32], index: 1, kind: input, shape index: {}]   ;;  %s2379_s2 = inlined_call_operand.vmem [shape: f32[32,32], index: 2, kind: input, shape index: {}]   ;;  %s2380_s3 = inlined_call_operand.vmem [shape: f32[32,32], index: 3, kind: input, shape index: {}]   ;;  %s2381_s4 = inlined_call_operand.hbm [shape: f32[32,32], index: 4, kind: input, shape index: {}]   ;;  %s2382_s5 = inlined_call_operand.vmem [shape: f32[1,32], index: 5, kind: input, shape index: {}]   ;;  %s2383_s6 = inlined_call_operand.vmem [shape: f32[1,32], index: 6, kind: input, shape index: {}]   ;;  %s2384_s7 = inlined_call_operand.vmem [shape: f32[1,32], index: 7, kind: input, shape index: {}]   ;;  %s2385_s8 = inlined_call_operand.hbm [shape: f32[32,64], index: 8, kind: input, shape index: {}]   ;;  %s2386_s9 = inlined_call_operand.vmem [shape: f32[1,64], index: 9, kind: input, shape index: {}]   ;;  %s2387_s10 = inlined_call_operand.vmem [shape: f32[64,32], index: 10, kind: input, shape index: {}]   ;;  %s2388_s11 = inlined_call_operand.vmem [shape: f32[1,32], index: 11, kind: input, shape index: {}]   ;;  %s2389_s12 = inlined_call_operand.vmem [shape: f32[1,32], index: 12, kind: input, shape index: {}]   ;;  %s2390_s13 = inlined_call_operand.vmem [shape: f32[1,32], index: 13, kind: input, shape index: {}]   ;;  %s2391_s14 = inlined_call_operand.hbm [shape: f32[2,8,32], index: 14, kind: output, shape index: {0}]   ;;  %s2392_s15 = inlined_call_operand.hbm [shape: f32[2,8,8], index: 15, kind: output, shape index: {1}]  }
   0x1   :  { %2401 = sst [smem:[#allocation17_spill]] %s2377_s0 }
   0x2   :  { %2402 = sst [smem:[#allocation18_spill]] %s2378_s1 }
   0x3   :  { %2403 = sst [smem:[#allocation19_spill]] %s2379_s2 }
   0x4   :  { %2404 = sst [smem:[#allocation20_spill]] %s2388_s11 }
   0x5   :  { %2405 = sst [smem:[#allocation21_spill]] %s2389_s12 }
   0x6   :  { %2406 = sst [smem:[#allocation22_spill]] %s2390_s13 }
   0x7   :  { %2407 = sst [smem:[#allocation23_spill]] %s2391_s14 }
   0x8   :  { %2408 = sst [smem:[#allocation24_spill]] %s2392_s15 }
   0x9   :  { %21 = vsyncpa [#allocation3], 0 }
   0xa   :  { %23 = vsyncpa [#allocation3 + $0x1], 0 }
   0xb   :  { %24 = vsyncpa [#allocation6], 0 }
   0xc   :  { %25 = vsyncpa [#allocation4], 0 }
   0xd   :  { %27 = vsyncpa [#allocation4 + $0x1], 0 }
   0xe   :  { %28 = vsyncpa [#allocation10], 0 }
   0xf   :  { %30 = vsyncpa [#allocation10 + $0x1], 0  ;;  %s1977_s18 = smov 0   ;;  %s1979_s19 = smov 0  }
  0x10   :  { %s1981_s20 = smov 0   ;;  %s1983_s21 = smov 0  }
  0x11 LB: > { %2409 = sst [smem:[#allocation15_spill]] %s1873_s18  ;;  %s1998_s22 = sadd.s32 4294967295, %s1885_s21   ;;  %s1885_s21 = sphi %s1983_s21, %s2438_s21   ;;  %s1881_s20 = sphi %s1981_s20, %s2437_s20   ;;  %s1877_s19 = sphi %s1979_s19, %s2436_s19   ;;  %s1873_s18 = sphi %s1977_s18, %s2435_s18  }
  0x12   : > { %s1413_s23 = sadd.s32 4294967294, %s1885_s21   ;;  %p56_p0 = scmp.ne.s32.totalorder %s1877_s19, %s1873_s18 }
  0x13   : > { %p2396_p1 = scmp.eq.s32.totalorder %s1998_s22, 0  ;;  %p359_p3 = scmp.eq.s32.totalorder %s1413_s23, 1 }
  0x14   : > { %p1414_p5 = scmp.ge.s32.totalorder %s1885_s21, 1  ;;  %p392_p7 = scmp.lt.s32.totalorder %s1885_s21, 3 }
  0x15   : > { %p2007_p4 = por %p2396_p1, %p56_p0  ;;  %p2012_p6 = por %p359_p3, %p56_p0 }
  0x16   : > { %p2017_p8 = pnand %p1414_p5, %p392_p7  ;;  %s1887_s27 = smov [#allocation5]  }
  0x17   : > { %s2410_s24 = scalar_select %p2007_p4, 1, 0 }
  0x18   : > { %s2411_s25 = scalar_select %p2012_p6, 1, 0 }
  0x19   : > { %s413_s28 = sshll.u32 %s1887_s27, 4  ;;  %p1626_p9 = pneg %p2017_p8  ;;  %s2021_s28 = int_to_ptr.vmem [resolvable:$true] %s413_s28 }
  0x1a   : > { %2412 = sst [smem:[#allocation16_spill]] %s2411_s25  ;;  %s1888_s30 = smov [#allocation7]  }
  0x1b   : > { %p2028_p11 = pnand %p1626_p9, %p2396_p1  ;;  %s435_s16 = sshll.u32 %s1888_s30, 4  ;;  %s2032_s16 = int_to_ptr.vmem [resolvable:$true] %s435_s16 }
  0x1c   : > { %s1697_s27 = scalar_lea.hbm %s2381_s4, 512 }
  0x1d   : > { %p1698_p12 = scmp.ne.s32.totalorder %s2381_s4, %s1697_s27  ;;  %p1699_p13 = pneg %p2028_p11 }
  0x1e   : > { %p1704_p5 = scmp.lt.u32.totalorder %s1697_s27, %s2381_s4 }
  0x1f   : > { %p1700_p0 = pnand %p1699_p13, %p1698_p12 }
  0x21   : > { %p1701_p3 = pneg %p1700_p0 }
  0x23   : > { %p1706_p7 = pnand %p1704_p5, %p1701_p3 }
  0x25   : > { %1709 = shalt.err (!%p1706_p7)
}
  0x26   : > { %s1710_s30 = scalar_lea.vmem %s2021_s28, 512  ;;  %p1718_p2 = scmp.lt.s32.totalorder %s2021_s28, %s2021_s28 }
  0x27   : > { %p1711_p9 = scmp.ne.s32.totalorder %s2021_s28, %s1710_s30  ;;  %p1719_p12 = scmp.lt.s32.totalorder %s1710_s30, %s1710_s30 }
  0x29   : > { %p1713_p10 = pnand %p1711_p9, %p1699_p13  ;;  %p1720_p0 = por %p1719_p12, %p1718_p2 }
  0x2b   : > { %p1714_p1 = pneg %p1713_p10 }
  0x2d   : > { %p1721_p6 = pnand %p1720_p0, %p1714_p1 }
  0x2f   : > { %1724 = shalt.err (!%p1721_p6)
}
  0x30   : > { %s1889_s13 = smov 128   ;;  %s1890_s14 = smov 8  }
  0x31   : > { %1629 = dma.hbm_to_vmem [thread:$0]  (!%p2028_p11), %s2381_s4, 512, %s2021_s28, [#allocation6], %s1889_s13, %s1889_s13, %s1890_s14  }
  0x32   : > { %s1725_s27 = scalar_lea.hbm %s2385_s8, 512 }
  0x33   : > { %p1726_p2 = scmp.ne.s32.totalorder %s2385_s8, %s1725_s27  ;;  %p1732_p10 = scmp.lt.u32.totalorder %s1725_s27, %s2385_s8 }
  0x35   : > { %p1728_p1 = pnand %p1726_p2, %p1699_p13 }
  0x37   : > { %p1729_p6 = pneg %p1728_p1 }
  0x39   : > { %p1734_p3 = pnand %p1732_p10, %p1729_p6 }
  0x3b   : > { %1737 = shalt.err (!%p1734_p3)
}
  0x3c   : > { %s1738_s28 = scalar_lea.vmem %s2032_s16, 512  ;;  %p1746_p12 = scmp.lt.s32.totalorder %s2032_s16, %s2032_s16 }
  0x3d   : > { %p1739_p5 = scmp.ne.s32.totalorder %s2032_s16, %s1738_s28  ;;  %p1747_p0 = scmp.lt.s32.totalorder %s1738_s28, %s1738_s28 }
  0x3f   : > { %p1741_p7 = pnand %p1739_p5, %p1699_p13  ;;  %p1748_p2 = por %p1747_p0, %p1746_p12 }
  0x41   : > { %p1742_p9 = pneg %p1741_p7 }
  0x43   : > { %p1749_p1 = pnand %p1748_p2, %p1742_p9 }
  0x45   : > { %1752 = shalt.err (!%p1749_p1)
}
  0x46   : > { %1632 = dma.hbm_to_vmem [thread:$0]  (!%p2028_p11), %s2385_s8, 512, %s2032_s16, [#allocation6], %s1889_s13, %s1889_s13, %s1890_s14  }
  0x47   : > { %s2087_s15 = sadd.s32 1, %s1885_s21   ;;  %s43_s29 = sadd.s32 1, %s1881_s20 }
  0x48   : > { %s40_s18 = ssub.s32 %s1885_s21, %s2087_s15  ;;  %p50_p13 = scmp.ne.s32.totalorder %s1881_s20, %s1877_s19 }
  0x49   : > { %p41_p6 = scmp.eq.s32.totalorder %s40_s18, 0  ;;  %p51_p10 = scmp.eq.s32.totalorder %s1885_s21, 0 }
  0x4a   : > { %p2415_p3 = scmp.eq.s32.totalorder %s1998_s22, 1  ;;  %p1646_p7 = scmp.lt.s32.totalorder %s1885_s21, 2 }
  0x4b   : > { %s2103_s17 = scalar_select %p41_p6, %s1881_s20, %s43_s29  }
  0x4c   : > { %p2097_p5 = por %p2415_p3, %p50_p13  ;;  %p52_p9 = por %p51_p10, %p50_p13 }
  0x4d   : > { %s464_s23 = sand.u32 1, %s1881_s20   ;;  %s1419_s16 = sshll.u32 %s1885_s21, 7 }
  0x4e   : > { %s2416_s25 = scalar_select %p2097_p5, 1, 0 }
  0x4f   : > { %s1418_s27 = sshll.u32 %s464_s23, 3  ;;  %s2417_s0 = sld [smem:[#allocation17_spill]] }
  0x50   : > { %s468_s28 = scalar_lea.vmem [#allocation2], %s1418_s27  ;;  %p2114_p11 = pnand %p1646_p7, %p52_p9 }
  0x51   : > { %s475_s11 = sshll.u32 %s468_s28, 4  ;;  %s465_s29 = scalar_lea.sflag [#allocation3], %s464_s23  ;;  %s2112_s11 = int_to_ptr.vmem [resolvable:$true] %s475_s11 }
  0x52   : > { %p1755_p0 = pneg %p2114_p11 }
  0x55   : > { %s2110_s30 = scalar_lea.hbm %s2417_s0, %s1419_s16  ;;  %s1758_s13 = scalar_lea.hbm %s2417_s0, 256 }
  0x56   : > { %s1753_s18 = scalar_lea.hbm %s2110_s30, 128  ;;  %p1759_p13 = scmp.lt.u32.totalorder %s2110_s30, %s2417_s0 }
  0x57   : > { %p1754_p12 = scmp.ne.s32.totalorder %s2110_s30, %s1753_s18  ;;  %p1760_p6 = scmp.lt.u32.totalorder %s1758_s13, %s1753_s18 }
  0x58   : > { %p1762_p3 = scmp.lt.u32.totalorder %s1753_s18, %s2110_s30 }
  0x59   : > { %p1756_p2 = pnand %p1755_p0, %p1754_p12  ;;  %p1761_p10 = por %p1760_p6, %p1759_p13 }
  0x5b   : > { %p1757_p1 = pneg %p1756_p2  ;;  %p1763_p7 = por %p1762_p3, %p1761_p10 }
  0x5d   : > { %p1764_p9 = pnand %p1763_p7, %p1757_p1 }
  0x5f   : > { %1767 = shalt.err (!%p1764_p9)
}
  0x60   : > { %s1768_s23 = scalar_lea.vmem %s2112_s11, 128  ;;  %s1891_s16 = smov [#allocation2]  }
  0x61   : > { %p1769_p12 = scmp.ne.s32.totalorder %s2112_s11, %s1768_s23  ;;  %s1773_s27 = sshll.u32 %s1891_s16, 4  ;;  %s1774_s27 = int_to_ptr.vmem [resolvable:$false] %s1773_s27 }
  0x62   : > { %s1775_s14 = scalar_lea.vmem %s1774_s27, 256  ;;  %p1776_p4 = scmp.lt.s32.totalorder %s2112_s11, %s1774_s27 }
  0x63   : > { %p1771_p2 = pnand %p1769_p12, %p1755_p0  ;;  %p1777_p13 = scmp.lt.s32.totalorder %s1775_s14, %s1768_s23 }
  0x65   : > { %p1772_p5 = pneg %p1771_p2  ;;  %p1778_p6 = por %p1777_p13, %p1776_p4 }
  0x67   : > { %p1779_p10 = pnand %p1778_p6, %p1772_p5 }
  0x69   : > { %1782 = shalt.err (!%p1779_p10)
}
  0x6a   : > { %1636 = dma.hbm_to_vmem [thread:$0]  (!%p2114_p11), %s2110_s30, 128, %s2112_s11, %s465_s29  }
  0x6b   : > { %484 = sbr.rel (%p2017_p8) target bundleno = 2383 (0x94f), region = 76  ;;  %s2146_s18 = sand.u32 (!%p2017_p8), 1, %s1877_s19  }
  0x6c   : > { %s2149_s13 = sshll.u32 (!%p2017_p8), %s2146_s18, 3  ;;  %s487_s28 = scalar_lea.sflag (!%p2017_p8), [#allocation3], %s2146_s18 }
  0x6d   : > { %s490_s23 = scalar_lea.vmem (!%p2017_p8), [#allocation2], %s2149_s13  ;;  %p2419_p4 = scmp.ne.s32.totalorder (!%p2017_p8), %s2410_s24, 0 }
  0x72   : > { %1856 = dma.done.wait (%p2419_p4), %s487_s28, 128  }
  0x73   : > { %1858 = vsyncadd (%p2419_p4), %s487_s28, 4294967168  ;;  %p2420_p5 = scmp.eq.s32.totalorder %s1998_s22, 0 }
  0x75   : > { %1860 = dma.done.wait (%p2420_p5), [#allocation6], 1024   ;;  %p2421_p8 = pmov %p2420_p5 }
  0x76   : > { %v1892_v0 = vmov 0.0|0.0   ;;  %vm1893_vm0 = vmmov 0   ;;  %v1894_v1 = vmov 0.0   ;;  %s2422_s1 = sld [smem:[#allocation18_spill]]  ;;  %s2423_s2 = sld [smem:[#allocation19_spill]]  ;;  %v2186_v10 = vld [vmem:[%s490_s23] sm:$0xff] }
  0x77   : > { %1862 = vsyncadd (%p2421_p8), [#allocation6], 4294966272  ;;  %1570 = vmatprep.subr.bf16.mxu1 %v1892_v0  ;;  %1494 = vmatprep.mubr.msk.f32.mxu1 %vm1893_vm0, %v1894_v1  ;;  %vm555_vm1 = vcmask 261120   ;;  %v704_v20 = vld [vmem:[%s2380_s3] sm:$0xff]  ;;  %v705_v21 = vld [vmem:[%s2380_s3 + $0x8] sm:$0xff]  ;;  %vm854_vm2 = vcmask 64512  }
  0x78   : > { %1582 = vmatprep.subr.bf16.mxu0 %v1892_v0  ;;  %1516 = vmatprep.mubr.msk.f32.mxu0 %vm1893_vm0, %v1894_v1  ;;  %v706_v22 = vld [vmem:[%s2380_s3 + $0x10] sm:$0xff]  ;;  %v1583_v23 = vpack.c.bf16 %v705_v21, %v704_v20  ;;  %v707_v24 = vld [vmem:[%s2380_s3 + $0x18] sm:$0xff]  ;;  %v941_v38 = vld [vmem:[#allocation5 + $0x10] sm:$0xff]  ;;  %s549_s11 = scalar_lea.vmem [#allocation9], %s2149_s13  ;;  %vm1154_vm3 = vcmask 523264   ;;  %s2424_s28 = sld [smem:[#allocation20_spill]] }
  0x79   : > { %v1586_v25 = vpack.c.bf16 %v707_v24, %v706_v22  ;;  %v939_v36 = vld [vmem:[#allocation5] sm:$0xff]  ;;  %v940_v37 = vld [vmem:[#allocation5 + $0x8] sm:$0xff]  ;;  %v942_v40 = vld [vmem:[#allocation5 + $0x18] sm:$0xff]  ;;  %s2400_s24 = sshll.u32 %s1998_s22, 7  ;;  %s2425_s12 = sld [smem:[#allocation24_spill]] }
  0x7a   : > { %1584 = vmatpush3.bf16.msra.mxu0 %v1583_v23  ;;  %v1589_v39 = vpack.c.bf16 %v940_v37, %v939_v36  ;;  %v1592_v41 = vpack.c.bf16 %v942_v40, %v941_v38  ;;  %v1432_v47 = vld [vmem:[%s2382_s5] ss:$0 sm:$0xff]  ;;  %v1054_v58 = vld [vmem:[#allocation7] sm:$0xff]  ;;  %v1055_v59 = vld [vmem:[#allocation7 + $0x8] sm:$0xff]  ;;  %s1292_s23 = sshll.u32 %s549_s11, 4  ;;  %s1266_s16 = scalar_lea.sflag [#allocation10], %s2146_s18  ;;  %s1293_s23 = int_to_ptr.vmem [resolvable:$true] %s1292_s23 }
  0x7b   : > { %1585 = vmatprep.subr.bf16.mxu0 %v1892_v0  ;;  %v1595_v60 = vpack.c.bf16 %v1055_v59, %v1054_v58  ;;  %v1056_v61 = vld [vmem:[#allocation7 + $0x10] sm:$0xff]  ;;  %v1057_v62 = vld [vmem:[#allocation7 + $0x18] sm:$0xff]  ;;  %s1783_s27 = scalar_lea.vmem %s1293_s23, 128  ;;  %p2426_p0 = scmp.ne.s32.totalorder %s2416_s25, 0 }
  0x7c   : > { %v551_v2 = vld [vmem:[%s2422_s1] sm:$0xff]  ;;  %v552_v3 = vld [vmem:[%s2422_s1 + $0x8] sm:$0xff]  ;;  %v553_v4 = vld [vmem:[%s2422_s1 + $0x10] sm:$0xff]  ;;  %v1598_v63 = vpack.c.bf16 %v1057_v62, %v1056_v61  ;;  %p1784_p11 = scmp.ne.s32.totalorder %s1293_s23, %s1783_s27  ;;  %s1895_s14 = smov [#allocation9]  }
  0x7d   : > { %v1571_v5 = vpack.c.bf16 %v552_v3, %v551_v2  ;;  %v554_v6 = vld [vmem:[%s2422_s1 + $0x18] sm:$0xff]  ;;  %v630_v8 = vld [vmem:[%s2423_s2] sm:$0xff]  ;;  %v631_v9 = vld [vmem:[%s2423_s2 + $0x8] sm:$0xff] }
  0x7e   : > { %v1574_v7 = vpack.c.bf16 %v554_v6, %v553_v4  ;;  %v1577_v11 = vpack.c.bf16 %v631_v9, %v630_v8  ;;  %v632_v12 = vld [vmem:[%s2423_s2 + $0x10] sm:$0xff]  ;;  %v633_v13 = vld [vmem:[%s2423_s2 + $0x18] sm:$0xff]  ;;  %1587 = vmatpush3.bf16.msra.mxu0 %v1586_v25  ;;  %v1140_v2 = vld [vmem:[%s2387_s10 + $0x8] sm:$0xff]  ;;  %p1785_p1 = pnand %p1784_p11, %p2426_p0 }
  0x7f   : > { %1572 = vmatpush3.bf16.msra.mxu1 %v1571_v5  ;;  %v1580_v14 = vpack.c.bf16 %v633_v13, %v632_v12  ;;  %1588 = vmatprep.subr.bf16.mxu0 %v1892_v0  ;;  %v1141_v3 = vld [vmem:[%s2387_s10 + $0x10] sm:$0xff]  ;;  %v1142_v5 = vld [vmem:[%s2387_s10 + $0x18] sm:$0xff]  ;;  %v1144_v8 = vld [vmem:[%s2387_s10 + $0x28] sm:$0xff]  ;;  %s2298_s29 = scalar_lea.hbm %s2425_s12, %s2400_s24 }
  0x80   : > { %1573 = vmatprep.subr.bf16.mxu1 %v1892_v0  ;;  %v1604_v6 = vpack.c.bf16 %v1142_v5, %v1141_v3  ;;  %v1436_v21 = vld [vmem:[%s2386_s9] ss:$0 sm:$0xff]  ;;  %p1786_p3 = pneg %p1785_p1 }
  0x81   : > { %1517 = vmatmul.mubr.msk.f32.vlgmr.msra.gmra.mrb[0].mxu0 %vm555_vm1, %v2186_v10 }
  0x82   : > { %1537 = vmatprep.mubr.msk.f32.mxu0 %vm1893_vm0, %v1894_v1  ;;  %1590 = vmatpush3.bf16.msra.mxu0 %v1589_v39 }
  0x83   : > { %1575 = vmatpush3.bf16.msra.mxu1 %v1574_v7  ;;  %1591 = vmatprep.subr.bf16.mxu0 %v1892_v0  ;;  %v1143_v7 = vld [vmem:[%s2387_s10 + $0x20] sm:$0xff] }
  0x84   : > { %1576 = vmatprep.subr.bf16.mxu1 %v1892_v0  ;;  %v1607_v9 = vpack.c.bf16 %v1144_v8, %v1143_v7 }
  0x86   : > { %1495 = vmatmul.mubr.msk.f32.vlgmr.msra.gmra.mrb[0].mxu1 %vm555_vm1, %v2186_v10  ;;  %1593 = vmatpush3.bf16.msra.mxu0 %v1592_v41 }
  0x87   : > { %1578 = vmatpush3.bf16.msra.mxu1 %v1577_v11  ;;  %1505 = vmatprep.mubr.msk.f32.mxu1 %vm1893_vm0, %v1894_v1 }
  0x88   : > { %1579 = vmatprep.subr.bf16.mxu1 %v1892_v0  ;;  %1600 = vmatprep.subr.bf16.mxu0 %v1892_v0 }
  0x8b   : > { %1581 = vmatpush3.bf16.msra.mxu1 %v1580_v14  ;;  %v1434_v14 = vld [vmem:[%s2383_s6] ss:$0 sm:$0xff] }
  0x8c   : > { %1519 = vmatprep.subr.mxu1 %v1894_v1 }
  0x8e   : > { %1506 = vmatmul.mubr.msk.f32.vlgmr.msra.gmra.mrb[2].mxu1 %vm555_vm1, %v2186_v10 }
  0x8f   : > { %1521 = vmatprep.mubr.msk.f32.mxu1 %vm1893_vm0, %v1894_v1 }
 0x154   : > { %v774_v34 = vpop.f32.mrb[0].mxu0 }
 0x155   : > { %v1518_v35 = vpop.f32.mrb[1].mxu0 }
 0x159   : > { %v625_v15 = vpop.f32.mrb[0].mxu1 }
 0x15a   : > { %v1496_v16 = vpop.f32.mrb[1].mxu1  ;;  %v629_v19 = vmul.f32 0.17677669, %v625_v15 }
 0x15b   : > { %v1435_v16 = vld [vmem:[%s2384_s7] ss:$0 sm:$0xff] }
 0x161   : > { %v700_v17 = vpop.f32.mrb[2].mxu1 }
 0x162   : > { %v1507_v18 = vpop.f32.mrb[3].mxu1  ;;  %1520 = vmatpush3.xpose.msk.msra.mxu1 %vm555_vm1, %v700_v17 }
 0x163   : > { %1524 = vmatprep.subr.mxu1 %v1894_v1 }
 0x165   : > { %1522 = vmatmul.mubr.msk.f32.vlgmr.msra.gmra.mrb[4].mxu1 %vm555_vm1, %v629_v19  ;;  %v1146_v19 = vld [vmem:[%s2387_s10 + $0x38] sm:$0xff] }
 0x166   : > { %1526 = vmatprep.mubr.msk.f32.mxu1 %vm1893_vm0, %v1894_v1  ;;  %1525 = vmatpush3.msra.mxu1 %v774_v34 }
 0x167   : > { %1594 = vmatprep.subr.bf16.mxu1 %v1892_v0 }
 0x238   : > { %v850_v26 = vpop.f32.mrb[4].mxu1 }
 0x239   : > { %v1523_v27 = vpop.f32.mrb[5].mxu1  ;;  %v855_v28 = vsel %vm854_vm2, %v850_v26, -inf }
 0x23a   : > { %856 = vmax.xlane.f32.xlu0 %v855_v28 }
 0x2c7   : > { %v857_v29 = vpop.xlane.xlu0 %856 }
 0x2c8   : > { %v858_v30 = vsub.f32 %v850_v26, %v857_v29  ;;  %v1438_v26 = vld [vmem:[%s2424_s28] ss:$0 sm:$0xff]  ;;  %s1787_s28 = sshll.u32 %s1895_s14, 4  ;;  %s1788_s28 = int_to_ptr.vmem [resolvable:$false] %s1787_s28 }
 0x2c9   : > { %s1789_s0 = scalar_lea.vmem %s1788_s28, 256  ;;  %p1790_p7 = scmp.lt.s32.totalorder %s1293_s23, %s1788_s28 }
 0x2ca   : > { %v859_v31 = vmul.f32 1.442695, %v858_v30  ;;  %p1791_p9 = scmp.lt.s32.totalorder %s1789_s0, %s1783_s27 }
 0x2cc   : > { %1689 = vpow2.f32 %v859_v31  ;;  %p1792_p12 = por %p1791_p9, %p1790_p7 }
 0x2ce   : > { %p1793_p2 = pnand %p1792_p12, %p1786_p3 }
 0x2d6   : > { %v1690_v32 = vpop.eup %1689 }
 0x2d7   : > { %v861_v33 = vsel %vm854_vm2, %v1690_v32, 0.0 }
 0x2d8   : > { %862 = vadd.xlane.f32.xlu0 %v861_v33 }
 0x365   : > { %v863_v42 = vpop.xlane.xlu0 %862 }
 0x366   : > { %1691 = vrcp.f32 %v863_v42 }
 0x370   : > { %v1692_v43 = vpop.eup %1691 }
 0x371   : > { %v865_v44 = vmul.f32 %v1692_v43, %v1690_v32 }
 0x373   : > { %1527 = vmatmul.mubr.msk.f32.vlgmr.msra.gmra.mrb[6].mxu1 %vm854_vm2, %v865_v44  ;;  %1259 = vst.msk [vmem:[%s549_s11] sm:$0xff] %vm854_vm2, %v865_v44 }
 0x374   : > { %1548 = vmatprep.mubr.msk.f32.mxu1 %vm1893_vm0, %v1894_v1  ;;  %1596 = vmatpush3.bf16.msra.mxu1 %v1595_v60 }
 0x375   : > { %1597 = vmatprep.subr.bf16.mxu1 %v1892_v0 }
 0x378   : > { %1599 = vmatpush3.bf16.msra.mxu1 %v1598_v63 }
 0x446   : > { %v935_v45 = vpop.f32.mrb[6].mxu1 }
 0x447   : > { %v1528_v46 = vpop.f32.mrb[7].mxu1  ;;  %1538 = vmatmul.mubr.msk.f32.vlgmr.msra.gmra.mrb[2].mxu0 %vm555_vm1, %v935_v45 }
 0x448   : > { %1567 = vmatprep.mubr.msk.f32.mxu0 %vm1893_vm0, %v1894_v1  ;;  %v1139_v1 = vld [vmem:[%s2387_s10] sm:$0xff] }
 0x449   : > { %v1601_v4 = vpack.c.bf16 %v1140_v2, %v1139_v1 }
 0x44b   : > { %1602 = vmatpush3.bf16.msra.mxu0 %v1601_v4 }
 0x44c   : > { %1603 = vmatprep.subr.bf16.mxu0 %v1892_v0 }
 0x44f   : > { %1605 = vmatpush3.bf16.msra.mxu0 %v1604_v6 }
 0x450   : > { %1606 = vmatprep.subr.bf16.mxu0 %v1892_v0 }
 0x453   : > { %1608 = vmatpush3.bf16.msra.mxu0 %v1607_v9 }
 0x454   : > { %1609 = vmatprep.subr.bf16.mxu0 %v1892_v0  ;;  %v1145_v0 = vld [vmem:[%s2387_s10 + $0x30] sm:$0xff] }
 0x455   : > { %v1610_v20 = vpack.c.bf16 %v1146_v19, %v1145_v0 }
 0x457   : > { %1611 = vmatpush3.bf16.msra.mxu0 %v1610_v20 }
 0x51a   : > { %v1019_v48 = vpop.f32.mrb[2].mxu0 }
 0x51b   : > { %v1020_v49 = vadd.f32 %v1432_v47, %v1019_v48  ;;  %v1539_v50 = vpop.f32.mrb[3].mxu0 }
 0x51d   : > { %v1023_v51 = vadd.f32 %v1020_v49, %v2186_v10 }
 0x51f   : > { %v1026_v52 = vsel %vm555_vm1, %v1023_v51, 0.0 }
 0x520   : > { %1027 = vadd.xlane.f32.xlu1 %v1026_v52 }
 0x5ad   : > { %v1028_v53 = vpop.xlane.xlu1 %1027 }
 0x5ae   : > { %v1030_v54 = vmul.f32 0.03125, %v1028_v53 }
 0x5b0   : > { %v1031_v55 = vsub.f32 %v1023_v51, %v1030_v54 }
 0x5b2   : > { %v1032_v56 = vmul.f32 %v1031_v55, %v1031_v55 }
 0x5b4   : > { %v1033_v57 = vsel %vm555_vm1, %v1032_v56, 0.0 }
 0x5b5   : > { %1034 = vadd.xlane.f32.xlu1 %v1033_v57 }
 0x642   : > { %v1035_v10 = vpop.xlane.xlu1 %1034 }
 0x643   : > { %v1036_v11 = vmul.f32 0.03125, %v1035_v10 }
 0x645   : > { %v1037_v12 = vadd.f32 1e-05, %v1036_v11 }
 0x647   : > { %1693 = vrsqrt.f32 %v1037_v12 }
 0x651   : > { %v1694_v13 = vpop.eup %1693 }
 0x652   : > { %v1039_v15 = vmul.f32 %v1694_v13, %v1031_v55 }
 0x654   : > { %v1046_v17 = vmul.f32 %v1434_v14, %v1039_v15 }
 0x656   : > { %v1053_v18 = vadd.f32 %v1435_v16, %v1046_v17 }
 0x658   : > { %1549 = vmatmul.mubr.msk.f32.vlgmr.msra.gmra.mrb[8].mxu1 %vm555_vm1, %v1053_v18 }
 0x72b   : > { %v1134_v22 = vpop.f32.mrb[8].mxu1 }
 0x72c   : > { %v1135_v23 = vadd.f32 %v1436_v21, %v1134_v22  ;;  %v1550_v24 = vpop.f32.mrb[9].mxu1 }
 0x72e   : > { %v1138_v25 = vmax.f32 %v1135_v23, 0.0 }
 0x730   : > { %1568 = vmatmul.mubr.msk.f32.vlgmr.msra.gmra.mrb[4].mxu0 %vm1154_vm3, %v1138_v25 }
 0x803   : > { %v1224_v27 = vpop.f32.mrb[4].mxu0 }
 0x804   : > { %v1225_v28 = vadd.f32 %v1438_v26, %v1224_v27  ;;  %v1569_v29 = vpop.f32.mrb[5].mxu0 }
 0x806   : > { %v1228_v30 = vadd.f32 %v1225_v28, %v1053_v18 }
 0x808   : > { %v1231_v31 = vsel %vm555_vm1, %v1228_v30, 0.0 }
 0x809   : > { %1232 = vadd.xlane.f32.xlu0 %v1231_v31 }
 0x896   : > { %v1233_v32 = vpop.xlane.xlu0 %1232 }
 0x897   : > { %v1234_v33 = vmul.f32 0.03125, %v1233_v32 }
 0x899   : > { %v1235_v34 = vsub.f32 %v1228_v30, %v1234_v33 }
 0x89b   : > { %v1236_v35 = vmul.f32 %v1235_v34, %v1235_v34 }
 0x89d   : > { %v1237_v36 = vsel %vm555_vm1, %v1236_v35, 0.0 }
 0x89e   : > { %1238 = vadd.xlane.f32.xlu1 %v1237_v36 }
 0x89f   : > { %1796 = shalt.err (!%p1793_p2)
}
 0x8a0   : > { %s1797_s11 = scalar_lea.hbm %s2298_s29, 128  ;;  %s1801_s14 = scalar_lea.hbm %s2425_s12, 256 }
 0x8a1   : > { %p1798_p13 = scmp.ne.s32.totalorder %s2298_s29, %s1797_s11  ;;  %p1802_p4 = scmp.lt.u32.totalorder %s2298_s29, %s2425_s12 }
 0x8a2   : > { %p1803_p5 = scmp.lt.u32.totalorder %s1801_s14, %s1797_s11  ;;  %p1805_p11 = scmp.lt.u32.totalorder %s1797_s11, %s2298_s29 }
 0x8a3   : > { %p1799_p6 = pnand %p1798_p13, %p2426_p0 }
 0x8a4   : > { %p1804_p8 = por %p1803_p5, %p1802_p4 }
 0x8a5   : > { %p1800_p10 = pneg %p1799_p6 }
 0x8a6   : > { %p1806_p1 = por %p1805_p11, %p1804_p8 }
 0x8a8   : > { %p1807_p3 = pnand %p1806_p1, %p1800_p10 }
 0x8aa   : > { %1810 = shalt.err (!%p1807_p3)
}
 0x8ab   : > { %1623 = dma.vmem_to_hbm [thread:$0]  (%p2426_p0), %s1293_s23, 128, %s2298_s29, %s1266_s16  }
 0x8ac   : > { %s2427_s27 = sld [smem:[#allocation21_spill]]  ;;  %s2428_s30 = sld [smem:[#allocation22_spill]] }
 0x8ad   : > { %s542_s14 = scalar_lea.vmem [#allocation8], %s2149_s13  ;;  %s2429_s29 = sshll.u32 %s1998_s22, 7 }
 0x8ae   : > { %s1279_s28 = sshll.u32 %s542_s14, 4  ;;  %s2430_s1 = sld [smem:[#allocation23_spill]]  ;;  %s2334_s28 = int_to_ptr.vmem [resolvable:$true] %s1279_s28 }
 0x8af   : > { %s1261_s0 = scalar_lea.sflag [#allocation4], %s2146_s18  ;;  %s1811_s24 = scalar_lea.vmem %s2334_s28, 128 }
 0x8b0   : > { %p1812_p7 = scmp.ne.s32.totalorder %s2334_s28, %s1811_s24  ;;  %s1896_s13 = smov [#allocation8]  }
 0x8b1   : > { %s1815_s22 = sshll.u32 %s1896_s13, 4  ;;  %s1816_s22 = int_to_ptr.vmem [resolvable:$false] %s1815_s22 }
 0x8b2   : > { %v1440_v41 = vld [vmem:[%s2427_s27] ss:$0 sm:$0xff]  ;;  %p1813_p9 = pnand %p1812_p7, %p2426_p0  ;;  %s1817_s27 = scalar_lea.vmem %s1816_s22, 256 }
 0x8b3   : > { %v1441_v43 = vld [vmem:[%s2428_s30] ss:$0 sm:$0xff]  ;;  %p1818_p2 = scmp.lt.s32.totalorder %s2334_s28, %s1816_s22  ;;  %p1819_p13 = scmp.lt.s32.totalorder %s1817_s27, %s1811_s24 }
 0x8b4   : > { %s2332_s2 = scalar_lea.hbm %s2430_s1, %s2429_s29  ;;  %p1814_p12 = pneg %p1813_p9 }
 0x8b5   : > { %p1820_p6 = por %p1819_p13, %p1818_p2 }
 0x8b7   : > { %p1821_p10 = pnand %p1820_p6, %p1814_p12 }
 0x92b   : > { %v1239_v37 = vpop.xlane.xlu1 %1238 }
 0x92c   : > { %v1240_v38 = vmul.f32 0.03125, %v1239_v37 }
 0x92e   : > { %v1241_v39 = vadd.f32 1e-05, %v1240_v38 }
 0x930   : > { %1695 = vrsqrt.f32 %v1241_v39 }
 0x93a   : > { %v1696_v40 = vpop.eup %1695 }
 0x93b   : > { %v1243_v42 = vmul.f32 %v1696_v40, %v1235_v34 }
 0x93d   : > { %v1250_v44 = vmul.f32 %v1440_v41, %v1243_v42 }
 0x93f   : > { %v1257_v45 = vadd.f32 %v1441_v43, %v1250_v44 }
 0x941   : > { %1258 = vst.msk [vmem:[%s542_s14] sm:$0xff] %vm555_vm1, %v1257_v45 }
 0x942   : > { %1824 = shalt.err (!%p1821_p10)
}
 0x943   : > { %s1825_s18 = scalar_lea.hbm %s2332_s2, 128  ;;  %s1829_s30 = scalar_lea.hbm %s2430_s1, 256 }
 0x944   : > { %p1826_p4 = scmp.ne.s32.totalorder %s2332_s2, %s1825_s18  ;;  %p1830_p11 = scmp.lt.u32.totalorder %s2332_s2, %s2430_s1 }
 0x945   : > { %p1831_p1 = scmp.lt.u32.totalorder %s1829_s30, %s1825_s18  ;;  %p1833_p7 = scmp.lt.u32.totalorder %s1825_s18, %s2332_s2 }
 0x946   : > { %p1827_p5 = pnand %p1826_p4, %p2426_p0 }
 0x947   : > { %p1832_p3 = por %p1831_p1, %p1830_p11 }
 0x948   : > { %p1828_p8 = pneg %p1827_p5 }
 0x949   : > { %p1834_p9 = por %p1833_p7, %p1832_p3 }
 0x94b   : > { %p1835_p12 = pnand %p1834_p9, %p1828_p8 }
 0x94d   : > { %1838 = shalt.err (!%p1835_p12)
}
 0x94e   : > { %1622 = dma.vmem_to_hbm [thread:$0]  (%p2426_p0), %s2334_s28, 128, %s2332_s2, %s1261_s0  }
 0x94f PF: > { %s2431_s23 = sld [smem:[#allocation15_spill]]  ;;  %s2432_s16 = sld [smem:[#allocation16_spill]] }
 0x950   : > { %p2434_p13 = scmp.ge.s32.totalorder %s1885_s21, 2 }
 0x955   : > { %s1304_s24 = sand.u32 1, %s2431_s23   ;;  %p2433_p2 = scmp.ne.s32.totalorder %s2432_s16, 0 }
 0x956   : > { %s1305_s13 = scalar_lea.sflag [#allocation4], %s1304_s24 }
 0x957   : > { %p1638_p6 = pnand %p2434_p13, %p2433_p2 }
 0x959   : > { %1864 = dma.done.wait (!%p1638_p6), %s1305_s13, 128  }
 0x95a   : > { %1866 = vsyncadd (!%p1638_p6), %s1305_s13, 4294967168  ;;  %s1314_s22 = scalar_lea.sflag [#allocation10], %s1304_s24 }
 0x95b   : > { %1868 = dma.done.wait (!%p1638_p6), %s1314_s22, 128  }
 0x95c   : > { %1870 = vsyncadd (!%p1638_p6), %s1314_s22, 4294967168  ;;  %p33_p0 = scmp.ge.s32.totalorder %s2087_s15, 4   ;;  %s2435_s18 = smov %s1877_s19 }
 0x95d   : > { %s2436_s19 = smov %s1881_s20  ;;  %s2437_s20 = smov %s2103_s17 }
 0x95e   : > { %s2438_s21 = smov %s2087_s15  ;;  %35 = sbr.rel (!%p33_p0) target bundleno = 17 (0x11), region = 146 }
 0x965   :  { %1319 = vsyncpa [#allocation3], 1 }
 0x966   :  { %1321 = vsyncpa [#allocation3 + $0x1], 1 }
 0x967   :  { %1322 = vsyncpa [#allocation6], 1 }
 0x968   :  { %1323 = vsyncpa [#allocation4], 1 }
 0x969   :  { %1325 = vsyncpa [#allocation4 + $0x1], 1 }
 0x96a   :  { %1326 = vsyncpa [#allocation10], 1 }
 0x96b   :  { %1328 = vsyncpa [#allocation10 + $0x1], 1 }

// kernel: tpu_custom_call.1
= control target key start
LH: loop header
LB: loop body
LE: loop exit
PB: predicated region body
PF: predicated region fallthrough
CT: control target
= control target key end

     0   :  { %s2377_s0 = inlined_call_operand.hbm [shape: f32[2,8,32], index: 0, kind: input, shape index: {}]   ;;  %s2378_s1 = inlined_call_operand.vmem [shape: f32[32,32], index: 1, kind: input, shape index: {}]   ;;  %s2379_s2 = inlined_call_operand.vmem [shape: f32[32,32], index: 2, kind: input, shape index: {}]   ;;  %s2380_s3 = inlined_call_operand.vmem [shape: f32[32,32], index: 3, kind: input, shape index: {}]   ;;  %s2381_s4 = inlined_call_operand.hbm [shape: f32[32,32], index: 4, kind: input, shape index: {}]   ;;  %s2382_s5 = inlined_call_operand.vmem [shape: f32[1,32], index: 5, kind: input, shape index: {}]   ;;  %s2383_s6 = inlined_call_operand.vmem [shape: f32[1,32], index: 6, kind: input, shape index: {}]   ;;  %s2384_s7 = inlined_call_operand.vmem [shape: f32[1,32], index: 7, kind: input, shape index: {}]   ;;  %s2385_s8 = inlined_call_operand.hbm [shape: f32[32,64], index: 8, kind: input, shape index: {}]   ;;  %s2386_s9 = inlined_call_operand.vmem [shape: f32[1,64], index: 9, kind: input, shape index: {}]   ;;  %s2387_s10 = inlined_call_operand.vmem [shape: f32[64,32], index: 10, kind: input, shape index: {}]   ;;  %s2388_s11 = inlined_call_operand.vmem [shape: f32[1,32], index: 11, kind: input, shape index: {}]   ;;  %s2389_s12 = inlined_call_operand.vmem [shape: f32[1,32], index: 12, kind: input, shape index: {}]   ;;  %s2390_s13 = inlined_call_operand.vmem [shape: f32[1,32], index: 13, kind: input, shape index: {}]   ;;  %s2391_s14 = inlined_call_operand.hbm [shape: f32[2,8,32], index: 14, kind: output, shape index: {0}]   ;;  %s2392_s15 = inlined_call_operand.hbm [shape: f32[2,8,8], index: 15, kind: output, shape index: {1}]  }
   0x1   :  { %2401 = sst [smem:[#allocation17_spill]] %s2377_s0 }
   0x2   :  { %2402 = sst [smem:[#allocation18_spill]] %s2378_s1 }
   0x3   :  { %2403 = sst [smem:[#allocation19_spill]] %s2379_s2 }
   0x4   :  { %2404 = sst [smem:[#allocation20_spill]] %s2388_s11 }
   0x5   :  { %2405 = sst [smem:[#allocation21_spill]] %s2389_s12 }
   0x6   :  { %2406 = sst [smem:[#allocation22_spill]] %s2390_s13 }
   0x7   :  { %2407 = sst [smem:[#allocation23_spill]] %s2391_s14 }
   0x8   :  { %2408 = sst [smem:[#allocation24_spill]] %s2392_s15 }
   0x9   :  { %21 = vsyncpa [#allocation3], 0 }
   0xa   :  { %23 = vsyncpa [#allocation3 + $0x1], 0 }
   0xb   :  { %24 = vsyncpa [#allocation6], 0 }
   0xc   :  { %25 = vsyncpa [#allocation4], 0 }
   0xd   :  { %27 = vsyncpa [#allocation4 + $0x1], 0 }
   0xe   :  { %28 = vsyncpa [#allocation10], 0 }
   0xf   :  { %30 = vsyncpa [#allocation10 + $0x1], 0  ;;  %s1977_s18 = smov 0   ;;  %s1979_s19 = smov 0  }
  0x10   :  { %s1981_s20 = smov 0   ;;  %s1983_s21 = smov 0  }
  0x11 LB: > { %2409 = sst [smem:[#allocation15_spill]] %s1873_s18  ;;  %s1998_s22 = sadd.s32 4294967295, %s1885_s21   ;;  %s1885_s21 = sphi %s1983_s21, %s2438_s21   ;;  %s1881_s20 = sphi %s1981_s20, %s2437_s20   ;;  %s1877_s19 = sphi %s1979_s19, %s2436_s19   ;;  %s1873_s18 = sphi %s1977_s18, %s2435_s18  }
  0x12   : > { %s1413_s23 = sadd.s32 4294967294, %s1885_s21   ;;  %p56_p0 = scmp.ne.s32.totalorder %s1877_s19, %s1873_s18 }
  0x13   : > { %p2396_p1 = scmp.eq.s32.totalorder %s1998_s22, 0  ;;  %p359_p3 = scmp.eq.s32.totalorder %s1413_s23, 1 }
  0x14   : > { %p1414_p5 = scmp.ge.s32.totalorder %s1885_s21, 1  ;;  %p392_p7 = scmp.lt.s32.totalorder %s1885_s21, 3 }
  0x15   : > { %p2007_p4 = por %p2396_p1, %p56_p0  ;;  %p2012_p6 = por %p359_p3, %p56_p0 }
  0x16   : > { %p2017_p8 = pnand %p1414_p5, %p392_p7  ;;  %s1887_s27 = smov [#allocation5]  }
  0x17   : > { %s2410_s24 = scalar_select %p2007_p4, 1, 0 }
  0x18   : > { %s2411_s25 = scalar_select %p2012_p6, 1, 0 }
  0x19   : > { %s413_s28 = sshll.u32 %s1887_s27, 4  ;;  %p1626_p9 = pneg %p2017_p8  ;;  %s2021_s28 = int_to_ptr.vmem [resolvable:$true] %s413_s28 }
  0x1a   : > { %2412 = sst [smem:[#allocation16_spill]] %s2411_s25  ;;  %s1888_s30 = smov [#allocation7]  }
  0x1b   : > { %p2028_p11 = pnand %p1626_p9, %p2396_p1  ;;  %s435_s16 = sshll.u32 %s1888_s30, 4  ;;  %s2032_s16 = int_to_ptr.vmem [resolvable:$true] %s435_s16 }
  0x1c   : > { %s1697_s27 = scalar_lea.hbm %s2381_s4, 512 }
  0x1d   : > { %p1698_p12 = scmp.ne.s32.totalorder %s2381_s4, %s1697_s27  ;;  %p1699_p13 = pneg %p2028_p11 }
  0x1e   : > { %p1704_p5 = scmp.lt.u32.totalorder %s1697_s27, %s2381_s4 }
  0x1f   : > { %p1700_p0 = pnand %p1699_p13, %p1698_p12 }
  0x21   : > { %p1701_p3 = pneg %p1700_p0 }
  0x23   : > { %p1706_p7 = pnand %p1704_p5, %p1701_p3 }
  0x25   : > { %1709 = shalt.err (!%p1706_p7)
}
  0x26   : > { %s1710_s30 = scalar_lea.vmem %s2021_s28, 512  ;;  %p1718_p2 = scmp.lt.s32.totalorder %s2021_s28, %s2021_s28 }
  0x27   : > { %p1711_p9 = scmp.ne.s32.totalorder %s2021_s28, %s1710_s30  ;;  %p1719_p12 = scmp.lt.s32.totalorder %s1710_s30, %s1710_s30 }
  0x29   : > { %p1713_p10 = pnand %p1711_p9, %p1699_p13  ;;  %p1720_p0 = por %p1719_p12, %p1718_p2 }
  0x2b   : > { %p1714_p1 = pneg %p1713_p10 }
  0x2d   : > { %p1721_p6 = pnand %p1720_p0, %p1714_p1 }
  0x2f   : > { %1724 = shalt.err (!%p1721_p6)
}
  0x30   : > { %s1889_s13 = smov 128   ;;  %s1890_s14 = smov 8  }
  0x31   : > { %1629 = dma.hbm_to_vmem [thread:$0]  (!%p2028_p11), %s2381_s4, 512, %s2021_s28, [#allocation6], %s1889_s13, %s1889_s13, %s1890_s14  }
  0x32   : > { %s1725_s27 = scalar_lea.hbm %s2385_s8, 512 }
  0x33   : > { %p1726_p2 = scmp.ne.s32.totalorder %s2385_s8, %s1725_s27  ;;  %p1732_p10 = scmp.lt.u32.totalorder %s1725_s27, %s2385_s8 }
  0x35   : > { %p1728_p1 = pnand %p1726_p2, %p1699_p13 }
  0x37   : > { %p1729_p6 = pneg %p1728_p1 }
  0x39   : > { %p1734_p3 = pnand %p1732_p10, %p1729_p6 }
  0x3b   : > { %1737 = shalt.err (!%p1734_p3)
}
  0x3c   : > { %s1738_s28 = scalar_lea.vmem %s2032_s16, 512  ;;  %p1746_p12 = scmp.lt.s32.totalorder %s2032_s16, %s2032_s16 }
  0x3d   : > { %p1739_p5 = scmp.ne.s32.totalorder %s2032_s16, %s1738_s28  ;;  %p1747_p0 = scmp.lt.s32.totalorder %s1738_s28, %s1738_s28 }
  0x3f   : > { %p1741_p7 = pnand %p1739_p5, %p1699_p13  ;;  %p1748_p2 = por %p1747_p0, %p1746_p12 }
  0x41   : > { %p1742_p9 = pneg %p1741_p7 }
  0x43   : > { %p1749_p1 = pnand %p1748_p2, %p1742_p9 }
  0x45   : > { %1752 = shalt.err (!%p1749_p1)
}
  0x46   : > { %1632 = dma.hbm_to_vmem [thread:$0]  (!%p2028_p11), %s2385_s8, 512, %s2032_s16, [#allocation6], %s1889_s13, %s1889_s13, %s1890_s14  }
  0x47   : > { %s2087_s15 = sadd.s32 1, %s1885_s21   ;;  %s43_s29 = sadd.s32 1, %s1881_s20 }
  0x48   : > { %s40_s18 = ssub.s32 %s1885_s21, %s2087_s15  ;;  %p50_p13 = scmp.ne.s32.totalorder %s1881_s20, %s1877_s19 }
  0x49   : > { %p41_p6 = scmp.eq.s32.totalorder %s40_s18, 0  ;;  %p51_p10 = scmp.eq.s32.totalorder %s1885_s21, 0 }
  0x4a   : > { %p2415_p3 = scmp.eq.s32.totalorder %s1998_s22, 1  ;;  %p1646_p7 = scmp.lt.s32.totalorder %s1885_s21, 2 }
  0x4b   : > { %s2103_s17 = scalar_select %p41_p6, %s1881_s20, %s43_s29  }
  0x4c   : > { %p2097_p5 = por %p2415_p3, %p50_p13  ;;  %p52_p9 = por %p51_p10, %p50_p13 }
  0x4d   : > { %s464_s23 = sand.u32 1, %s1881_s20   ;;  %s1419_s16 = sshll.u32 %s1885_s21, 7 }
  0x4e   : > { %s2416_s25 = scalar_select %p2097_p5, 1, 0 }
  0x4f   : > { %s1418_s27 = sshll.u32 %s464_s23, 3  ;;  %s2417_s0 = sld [smem:[#allocation17_spill]] }
  0x50   : > { %s468_s28 = scalar_lea.vmem [#allocation2], %s1418_s27  ;;  %p2114_p11 = pnand %p1646_p7, %p52_p9 }
  0x51   : > { %s475_s11 = sshll.u32 %s468_s28, 4  ;;  %s465_s29 = scalar_lea.sflag [#allocation3], %s464_s23  ;;  %s2112_s11 = int_to_ptr.vmem [resolvable:$true] %s475_s11 }
  0x52   : > { %p1755_p0 = pneg %p2114_p11 }
  0x55   : > { %s2110_s30 = scalar_lea.hbm %s2417_s0, %s1419_s16  ;;  %s1758_s13 = scalar_lea.hbm %s2417_s0, 256 }
  0x56   : > { %s1753_s18 = scalar_lea.hbm %s2110_s30, 128  ;;  %p1759_p13 = scmp.lt.u32.totalorder %s2110_s30, %s2417_s0 }
  0x57   : > { %p1754_p12 = scmp.ne.s32.totalorder %s2110_s30, %s1753_s18  ;;  %p1760_p6 = scmp.lt.u32.totalorder %s1758_s13, %s1753_s18 }
  0x58   : > { %p1762_p3 = scmp.lt.u32.totalorder %s1753_s18, %s2110_s30 }
  0x59   : > { %p1756_p2 = pnand %p1755_p0, %p1754_p12  ;;  %p1761_p10 = por %p1760_p6, %p1759_p13 }
  0x5b   : > { %p1757_p1 = pneg %p1756_p2  ;;  %p1763_p7 = por %p1762_p3, %p1761_p10 }
  0x5d   : > { %p1764_p9 = pnand %p1763_p7, %p1757_p1 }
  0x5f   : > { %1767 = shalt.err (!%p1764_p9)
}
  0x60   : > { %s1768_s23 = scalar_lea.vmem %s2112_s11, 128  ;;  %s1891_s16 = smov [#allocation2]  }
  0x61   : > { %p1769_p12 = scmp.ne.s32.totalorder %s2112_s11, %s1768_s23  ;;  %s1773_s27 = sshll.u32 %s1891_s16, 4  ;;  %s1774_s27 = int_to_ptr.vmem [resolvable:$false] %s1773_s27 }
  0x62   : > { %s1775_s14 = scalar_lea.vmem %s1774_s27, 256  ;;  %p1776_p4 = scmp.lt.s32.totalorder %s2112_s11, %s1774_s27 }
  0x63   : > { %p1771_p2 = pnand %p1769_p12, %p1755_p0  ;;  %p1777_p13 = scmp.lt.s32.totalorder %s1775_s14, %s1768_s23 }
  0x65   : > { %p1772_p5 = pneg %p1771_p2  ;;  %p1778_p6 = por %p1777_p13, %p1776_p4 }
  0x67   : > { %p1779_p10 = pnand %p1778_p6, %p1772_p5 }
  0x69   : > { %1782 = shalt.err (!%p1779_p10)
}
  0x6a   : > { %1636 = dma.hbm_to_vmem [thread:$0]  (!%p2114_p11), %s2110_s30, 128, %s2112_s11, %s465_s29  }
  0x6b   : > { %484 = sbr.rel (%p2017_p8) target bundleno = 2383 (0x94f), region = 76  ;;  %s2146_s18 = sand.u32 (!%p2017_p8), 1, %s1877_s19  }
  0x6c   : > { %s2149_s13 = sshll.u32 (!%p2017_p8), %s2146_s18, 3  ;;  %s487_s28 = scalar_lea.sflag (!%p2017_p8), [#allocation3], %s2146_s18 }
  0x6d   : > { %s490_s23 = scalar_lea.vmem (!%p2017_p8), [#allocation2], %s2149_s13  ;;  %p2419_p4 = scmp.ne.s32.totalorder (!%p2017_p8), %s2410_s24, 0 }
  0x72   : > { %1856 = dma.done.wait (%p2419_p4), %s487_s28, 128  }
  0x73   : > { %1858 = vsyncadd (%p2419_p4), %s487_s28, 4294967168  ;;  %p2420_p5 = scmp.eq.s32.totalorder %s1998_s22, 0 }
  0x75   : > { %1860 = dma.done.wait (%p2420_p5), [#allocation6], 1024   ;;  %p2421_p8 = pmov %p2420_p5 }
  0x76   : > { %v1892_v0 = vmov 0.0|0.0   ;;  %vm1893_vm0 = vmmov 0   ;;  %v1894_v1 = vmov 0.0   ;;  %s2422_s1 = sld [smem:[#allocation18_spill]]  ;;  %s2423_s2 = sld [smem:[#allocation19_spill]]  ;;  %v2186_v10 = vld [vmem:[%s490_s23] sm:$0xff] }
  0x77   : > { %1862 = vsyncadd (%p2421_p8), [#allocation6], 4294966272  ;;  %1570 = vmatprep.subr.bf16.mxu1 %v1892_v0  ;;  %1494 = vmatprep.mubr.msk.f32.mxu1 %vm1893_vm0, %v1894_v1  ;;  %vm555_vm1 = vcmask 261120   ;;  %v704_v20 = vld [vmem:[%s2380_s3] sm:$0xff]  ;;  %v705_v21 = vld [vmem:[%s2380_s3 + $0x8] sm:$0xff]  ;;  %vm854_vm2 = vcmask 64512  }
  0x78   : > { %1582 = vmatprep.subr.bf16.mxu0 %v1892_v0  ;;  %1516 = vmatprep.mubr.msk.f32.mxu0 %vm1893_vm0, %v1894_v1  ;;  %v706_v22 = vld [vmem:[%s2380_s3 + $0x10] sm:$0xff]  ;;  %v1583_v23 = vpack.c.bf16 %v705_v21, %v704_v20  ;;  %v707_v24 = vld [vmem:[%s2380_s3 + $0x18] sm:$0xff]  ;;  %v941_v38 = vld [vmem:[#allocation5 + $0x10] sm:$0xff]  ;;  %s549_s11 = scalar_lea.vmem [#allocation9], %s2149_s13  ;;  %vm1154_vm3 = vcmask 523264   ;;  %s2424_s28 = sld [smem:[#allocation20_spill]] }
  0x79   : > { %v1586_v25 = vpack.c.bf16 %v707_v24, %v706_v22  ;;  %v939_v36 = vld [vmem:[#allocation5] sm:$0xff]  ;;  %v940_v37 = vld [vmem:[#allocation5 + $0x8] sm:$0xff]  ;;  %v942_v40 = vld [vmem:[#allocation5 + $0x18] sm:$0xff]  ;;  %s2400_s24 = sshll.u32 %s1998_s22, 7  ;;  %s2425_s12 = sld [smem:[#allocation24_spill]] }
  0x7a   : > { %1584 = vmatpush3.bf16.msra.mxu0 %v1583_v23  ;;  %v1589_v39 = vpack.c.bf16 %v940_v37, %v939_v36  ;;  %v1592_v41 = vpack.c.bf16 %v942_v40, %v941_v38  ;;  %v1432_v47 = vld [vmem:[%s2382_s5] ss:$0 sm:$0xff]  ;;  %v1054_v58 = vld [vmem:[#allocation7] sm:$0xff]  ;;  %v1055_v59 = vld [vmem:[#allocation7 + $0x8] sm:$0xff]  ;;  %s1292_s23 = sshll.u32 %s549_s11, 4  ;;  %s1266_s16 = scalar_lea.sflag [#allocation10], %s2146_s18  ;;  %s1293_s23 = int_to_ptr.vmem [resolvable:$true] %s1292_s23 }
  0x7b   : > { %1585 = vmatprep.subr.bf16.mxu0 %v1892_v0  ;;  %v1595_v60 = vpack.c.bf16 %v1055_v59, %v1054_v58  ;;  %v1056_v61 = vld [vmem:[#allocation7 + $0x10] sm:$0xff]  ;;  %v1057_v62 = vld [vmem:[#allocation7 + $0x18] sm:$0xff]  ;;  %s1783_s27 = scalar_lea.vmem %s1293_s23, 128  ;;  %p2426_p0 = scmp.ne.s32.totalorder %s2416_s25, 0 }
  0x7c   : > { %v551_v2 = vld [vmem:[%s2422_s1] sm:$0xff]  ;;  %v552_v3 = vld [vmem:[%s2422_s1 + $0x8] sm:$0xff]  ;;  %v553_v4 = vld [vmem:[%s2422_s1 + $0x10] sm:$0xff]  ;;  %v1598_v63 = vpack.c.bf16 %v1057_v62, %v1056_v61  ;;  %p1784_p11 = scmp.ne.s32.totalorder %s1293_s23, %s1783_s27  ;;  %s1895_s14 = smov [#allocation9]  }
  0x7d   : > { %v1571_v5 = vpack.c.bf16 %v552_v3, %v551_v2  ;;  %v554_v6 = vld [vmem:[%s2422_s1 + $0x18] sm:$0xff]  ;;  %v630_v8 = vld [vmem:[%s2423_s2] sm:$0xff]  ;;  %v631_v9 = vld [vmem:[%s2423_s2 + $0x8] sm:$0xff] }
  0x7e   : > { %v1574_v7 = vpack.c.bf16 %v554_v6, %v553_v4  ;;  %v1577_v11 = vpack.c.bf16 %v631_v9, %v630_v8  ;;  %v632_v12 = vld [vmem:[%s2423_s2 + $0x10] sm:$0xff]  ;;  %v633_v13 = vld [vmem:[%s2423_s2 + $0x18] sm:$0xff]  ;;  %1587 = vmatpush3.bf16.msra.mxu0 %v1586_v25  ;;  %v1140_v2 = vld [vmem:[%s2387_s10 + $0x8] sm:$0xff]  ;;  %p1785_p1 = pnand %p1784_p11, %p2426_p0 }
  0x7f   : > { %1572 = vmatpush3.bf16.msra.mxu1 %v1571_v5  ;;  %v1580_v14 = vpack.c.bf16 %v633_v13, %v632_v12  ;;  %1588 = vmatprep.subr.bf16.mxu0 %v1892_v0  ;;  %v1141_v3 = vld [vmem:[%s2387_s10 + $0x10] sm:$0xff]  ;;  %v1142_v5 = vld [vmem:[%s2387_s10 + $0x18] sm:$0xff]  ;;  %v1144_v8 = vld [vmem:[%s2387_s10 + $0x28] sm:$0xff]  ;;  %s2298_s29 = scalar_lea.hbm %s2425_s12, %s2400_s24 }
  0x80   : > { %1573 = vmatprep.subr.bf16.mxu1 %v1892_v0  ;;  %v1604_v6 = vpack.c.bf16 %v1142_v5, %v1141_v3  ;;  %v1436_v21 = vld [vmem:[%s2386_s9] ss:$0 sm:$0xff]  ;;  %p1786_p3 = pneg %p1785_p1 }
  0x81   : > { %1517 = vmatmul.mubr.msk.f32.vlgmr.msra.gmra.mrb[0].mxu0 %vm555_vm1, %v2186_v10 }
  0x82   : > { %1537 = vmatprep.mubr.msk.f32.mxu0 %vm1893_vm0, %v1894_v1  ;;  %1590 = vmatpush3.bf16.msra.mxu0 %v1589_v39 }
  0x83   : > { %1575 = vmatpush3.bf16.msra.mxu1 %v1574_v7  ;;  %1591 = vmatprep.subr.bf16.mxu0 %v1892_v0  ;;  %v1143_v7 = vld [vmem:[%s2387_s10 + $0x20] sm:$0xff] }
  0x84   : > { %1576 = vmatprep.subr.bf16.mxu1 %v1892_v0  ;;  %v1607_v9 = vpack.c.bf16 %v1144_v8, %v1143_v7 }
  0x86   : > { %1495 = vmatmul.mubr.msk.f32.vlgmr.msra.gmra.mrb[0].mxu1 %vm555_vm1, %v2186_v10  ;;  %1593 = vmatpush3.bf16.msra.mxu0 %v1592_v41 }
  0x87   : > { %1578 = vmatpush3.bf16.msra.mxu1 %v1577_v11  ;;  %1505 = vmatprep.mubr.msk.f32.mxu1 %vm1893_vm0, %v1894_v1 }
  0x88   : > { %1579 = vmatprep.subr.bf16.mxu1 %v1892_v0  ;;  %1600 = vmatprep.subr.bf16.mxu0 %v1892_v0 }
  0x8b   : > { %1581 = vmatpush3.bf16.msra.mxu1 %v1580_v14  ;;  %v1434_v14 = vld [vmem:[%s2383_s6] ss:$0 sm:$0xff] }
  0x8c   : > { %1519 = vmatprep.subr.mxu1 %v1894_v1 }
  0x8e   : > { %1506 = vmatmul.mubr.msk.f32.vlgmr.msra.gmra.mrb[2].mxu1 %vm555_vm1, %v2186_v10 }
  0x8f   : > { %1521 = vmatprep.mubr.msk.f32.mxu1 %vm1893_vm0, %v1894_v1 }
 0x154   : > { %v774_v34 = vpop.f32.mrb[0].mxu0 }
 0x155   : > { %v1518_v35 = vpop.f32.mrb[1].mxu0 }
 0x159   : > { %v625_v15 = vpop.f32.mrb[0].mxu1 }
 0x15a   : > { %v1496_v16 = vpop.f32.mrb[1].mxu1  ;;  %v629_v19 = vmul.f32 0.17677669, %v625_v15 }
 0x15b   : > { %v1435_v16 = vld [vmem:[%s2384_s7] ss:$0 sm:$0xff] }
 0x161   : > { %v700_v17 = vpop.f32.mrb[2].mxu1 }
 0x162   : > { %v1507_v18 = vpop.f32.mrb[3].mxu1  ;;  %1520 = vmatpush3.xpose.msk.msra.mxu1 %vm555_vm1, %v700_v17 }
 0x163   : > { %1524 = vmatprep.subr.mxu1 %v1894_v1 }
 0x165   : > { %1522 = vmatmul.mubr.msk.f32.vlgmr.msra.gmra.mrb[4].mxu1 %vm555_vm1, %v629_v19  ;;  %v1146_v19 = vld [vmem:[%s2387_s10 + $0x38] sm:$0xff] }
 0x166   : > { %1526 = vmatprep.mubr.msk.f32.mxu1 %vm1893_vm0, %v1894_v1  ;;  %1525 = vmatpush3.msra.mxu1 %v774_v34 }
 0x167   : > { %1594 = vmatprep.subr.bf16.mxu1 %v1892_v0 }
 0x238   : > { %v850_v26 = vpop.f32.mrb[4].mxu1 }
 0x239   : > { %v1523_v27 = vpop.f32.mrb[5].mxu1  ;;  %v855_v28 = vsel %vm854_vm2, %v850_v26, -inf }
 0x23a   : > { %856 = vmax.xlane.f32.xlu0 %v855_v28 }
 0x2c7   : > { %v857_v29 = vpop.xlane.xlu0 %856 }
 0x2c8   : > { %v858_v30 = vsub.f32 %v850_v26, %v857_v29  ;;  %v1438_v26 = vld [vmem:[%s2424_s28] ss:$0 sm:$0xff]  ;;  %s1787_s28 = sshll.u32 %s1895_s14, 4  ;;  %s1788_s28 = int_to_ptr.vmem [resolvable:$false] %s1787_s28 }
 0x2c9   : > { %s1789_s0 = scalar_lea.vmem %s1788_s28, 256  ;;  %p1790_p7 = scmp.lt.s32.totalorder %s1293_s23, %s1788_s28 }
 0x2ca   : > { %v859_v31 = vmul.f32 1.442695, %v858_v30  ;;  %p1791_p9 = scmp.lt.s32.totalorder %s1789_s0, %s1783_s27 }
 0x2cc   : > { %1689 = vpow2.f32 %v859_v31  ;;  %p1792_p12 = por %p1791_p9, %p1790_p7 }
 0x2ce   : > { %p1793_p2 = pnand %p1792_p12, %p1786_p3 }
 0x2d6   : > { %v1690_v32 = vpop.eup %1689 }
 0x2d7   : > { %v861_v33 = vsel %vm854_vm2, %v1690_v32, 0.0 }
 0x2d8   : > { %862 = vadd.xlane.f32.xlu0 %v861_v33 }
 0x365   : > { %v863_v42 = vpop.xlane.xlu0 %862 }
 0x366   : > { %1691 = vrcp.f32 %v863_v42 }
 0x370   : > { %v1692_v43 = vpop.eup %1691 }
 0x371   : > { %v865_v44 = vmul.f32 %v1692_v43, %v1690_v32 }
 0x373   : > { %1527 = vmatmul.mubr.msk.f32.vlgmr.msra.gmra.mrb[6].mxu1 %vm854_vm2, %v865_v44  ;;  %1259 = vst.msk [vmem:[%s549_s11] sm:$0xff] %vm854_vm2, %v865_v44 }
 0x374   : > { %1548 = vmatprep.mubr.msk.f32.mxu1 %vm1893_vm0, %v1894_v1  ;;  %1596 = vmatpush3.bf16.msra.mxu1 %v1595_v60 }
 0x375   : > { %1597 = vmatprep.subr.bf16.mxu1 %v1892_v0 }
 0x378   : > { %1599 = vmatpush3.bf16.msra.mxu1 %v1598_v63 }
 0x446   : > { %v935_v45 = vpop.f32.mrb[6].mxu1 }
 0x447   : > { %v1528_v46 = vpop.f32.mrb[7].mxu1  ;;  %1538 = vmatmul.mubr.msk.f32.vlgmr.msra.gmra.mrb[2].mxu0 %vm555_vm1, %v935_v45 }
 0x448   : > { %1567 = vmatprep.mubr.msk.f32.mxu0 %vm1893_vm0, %v1894_v1  ;;  %v1139_v1 = vld [vmem:[%s2387_s10] sm:$0xff] }
 0x449   : > { %v1601_v4 = vpack.c.bf16 %v1140_v2, %v1139_v1 }
 0x44b   : > { %1602 = vmatpush3.bf16.msra.mxu0 %v1601_v4 }
 0x44c   : > { %1603 = vmatprep.subr.bf16.mxu0 %v1892_v0 }
 0x44f   : > { %1605 = vmatpush3.bf16.msra.mxu0 %v1604_v6 }
 0x450   : > { %1606 = vmatprep.subr.bf16.mxu0 %v1892_v0 }
 0x453   : > { %1608 = vmatpush3.bf16.msra.mxu0 %v1607_v9 }
 0x454   : > { %1609 = vmatprep.subr.bf16.mxu0 %v1892_v0  ;;  %v1145_v0 = vld [vmem:[%s2387_s10 + $0x30] sm:$0xff] }
 0x455   : > { %v1610_v20 = vpack.c.bf16 %v1146_v19, %v1145_v0 }
 0x457   : > { %1611 = vmatpush3.bf16.msra.mxu0 %v1610_v20 }
 0x51a   : > { %v1019_v48 = vpop.f32.mrb[2].mxu0 }
 0x51b   : > { %v1020_v49 = vadd.f32 %v1432_v47, %v1019_v48  ;;  %v1539_v50 = vpop.f32.mrb[3].mxu0 }
 0x51d   : > { %v1023_v51 = vadd.f32 %v1020_v49, %v2186_v10 }
 0x51f   : > { %v1026_v52 = vsel %vm555_vm1, %v1023_v51, 0.0 }
 0x520   : > { %1027 = vadd.xlane.f32.xlu1 %v1026_v52 }
 0x5ad   : > { %v1028_v53 = vpop.xlane.xlu1 %1027 }
 0x5ae   : > { %v1030_v54 = vmul.f32 0.03125, %v1028_v53 }
 0x5b0   : > { %v1031_v55 = vsub.f32 %v1023_v51, %v1030_v54 }
 0x5b2   : > { %v1032_v56 = vmul.f32 %v1031_v55, %v1031_v55 }
 0x5b4   : > { %v1033_v57 = vsel %vm555_vm1, %v1032_v56, 0.0 }
 0x5b5   : > { %1034 = vadd.xlane.f32.xlu1 %v1033_v57 }
 0x642   : > { %v1035_v10 = vpop.xlane.xlu1 %1034 }
 0x643   : > { %v1036_v11 = vmul.f32 0.03125, %v1035_v10 }
 0x645   : > { %v1037_v12 = vadd.f32 1e-05, %v1036_v11 }
 0x647   : > { %1693 = vrsqrt.f32 %v1037_v12 }
 0x651   : > { %v1694_v13 = vpop.eup %1693 }
 0x652   : > { %v1039_v15 = vmul.f32 %v1694_v13, %v1031_v55 }
 0x654   : > { %v1046_v17 = vmul.f32 %v1434_v14, %v1039_v15 }
 0x656   : > { %v1053_v18 = vadd.f32 %v1435_v16, %v1046_v17 }
 0x658   : > { %1549 = vmatmul.mubr.msk.f32.vlgmr.msra.gmra.mrb[8].mxu1 %vm555_vm1, %v1053_v18 }
 0x72b   : > { %v1134_v22 = vpop.f32.mrb[8].mxu1 }
 0x72c   : > { %v1135_v23 = vadd.f32 %v1436_v21, %v1134_v22  ;;  %v1550_v24 = vpop.f32.mrb[9].mxu1 }
 0x72e   : > { %v1138_v25 = vmax.f32 %v1135_v23, 0.0 }
 0x730   : > { %1568 = vmatmul.mubr.msk.f32.vlgmr.msra.gmra.mrb[4].mxu0 %vm1154_vm3, %v1138_v25 }
 0x803   : > { %v1224_v27 = vpop.f32.mrb[4].mxu0 }
 0x804   : > { %v1225_v28 = vadd.f32 %v1438_v26, %v1224_v27  ;;  %v1569_v29 = vpop.f32.mrb[5].mxu0 }
 0x806   : > { %v1228_v30 = vadd.f32 %v1225_v28, %v1053_v18 }
 0x808   : > { %v1231_v31 = vsel %vm555_vm1, %v1228_v30, 0.0 }
 0x809   : > { %1232 = vadd.xlane.f32.xlu0 %v1231_v31 }
 0x896   : > { %v1233_v32 = vpop.xlane.xlu0 %1232 }
 0x897   : > { %v1234_v33 = vmul.f32 0.03125, %v1233_v32 }
 0x899   : > { %v1235_v34 = vsub.f32 %v1228_v30, %v1234_v33 }
 0x89b   : > { %v1236_v35 = vmul.f32 %v1235_v34, %v1235_v34 }
 0x89d   : > { %v1237_v36 = vsel %vm555_vm1, %v1236_v35, 0.0 }
 0x89e   : > { %1238 = vadd.xlane.f32.xlu1 %v1237_v36 }
 0x89f   : > { %1796 = shalt.err (!%p1793_p2)
}
 0x8a0   : > { %s1797_s11 = scalar_lea.hbm %s2298_s29, 128  ;;  %s1801_s14 = scalar_lea.hbm %s2425_s12, 256 }
 0x8a1   : > { %p1798_p13 = scmp.ne.s32.totalorder %s2298_s29, %s1797_s11  ;;  %p1802_p4 = scmp.lt.u32.totalorder %s2298_s29, %s2425_s12 }
 0x8a2   : > { %p1803_p5 = scmp.lt.u32.totalorder %s1801_s14, %s1797_s11  ;;  %p1805_p11 = scmp.lt.u32.totalorder %s1797_s11, %s2298_s29 }
 0x8a3   : > { %p1799_p6 = pnand %p1798_p13, %p2426_p0 }
 0x8a4   : > { %p1804_p8 = por %p1803_p5, %p1802_p4 }
 0x8a5   : > { %p1800_p10 = pneg %p1799_p6 }
 0x8a6   : > { %p1806_p1 = por %p1805_p11, %p1804_p8 }
 0x8a8   : > { %p1807_p3 = pnand %p1806_p1, %p1800_p10 }
 0x8aa   : > { %1810 = shalt.err (!%p1807_p3)
}
 0x8ab   : > { %1623 = dma.vmem_to_hbm [thread:$0]  (%p2426_p0), %s1293_s23, 128, %s2298_s29, %s1266_s16  }
 0x8ac   : > { %s2427_s27 = sld [smem:[#allocation21_spill]]  ;;  %s2428_s30 = sld [smem:[#allocation22_spill]] }
 0x8ad   : > { %s542_s14 = scalar_lea.vmem [#allocation8], %s2149_s13  ;;  %s2429_s29 = sshll.u32 %s1998_s22, 7 }
 0x8ae   : > { %s1279_s28 = sshll.u32 %s542_s14, 4  ;;  %s2430_s1 = sld [smem:[#allocation23_spill]]  ;;  %s2334_s28 = int_to_ptr.vmem [resolvable:$true] %s1279_s28 }
 0x8af   : > { %s1261_s0 = scalar_lea.sflag [#allocation4], %s2146_s18  ;;  %s1811_s24 = scalar_lea.vmem %s2334_s28, 128 }
 0x8b0   : > { %p1812_p7 = scmp.ne.s32.totalorder %s2334_s28, %s1811_s24  ;;  %s1896_s13 = smov [#allocation8]  }
 0x8b1   : > { %s1815_s22 = sshll.u32 %s1896_s13, 4  ;;  %s1816_s22 = int_to_ptr.vmem [resolvable:$false] %s1815_s22 }
 0x8b2   : > { %v1440_v41 = vld [vmem:[%s2427_s27] ss:$0 sm:$0xff]  ;;  %p1813_p9 = pnand %p1812_p7, %p2426_p0  ;;  %s1817_s27 = scalar_lea.vmem %s1816_s22, 256 }
 0x8b3   : > { %v1441_v43 = vld [vmem:[%s2428_s30] ss:$0 sm:$0xff]  ;;  %p1818_p2 = scmp.lt.s32.totalorder %s2334_s28, %s1816_s22  ;;  %p1819_p13 = scmp.lt.s32.totalorder %s1817_s27, %s1811_s24 }
 0x8b4   : > { %s2332_s2 = scalar_lea.hbm %s2430_s1, %s2429_s29  ;;  %p1814_p12 = pneg %p1813_p9 }
 0x8b5   : > { %p1820_p6 = por %p1819_p13, %p1818_p2 }
 0x8b7   : > { %p1821_p10 = pnand %p1820_p6, %p1814_p12 }
 0x92b   : > { %v1239_v37 = vpop.xlane.xlu1 %1238 }
 0x92c   : > { %v1240_v38 = vmul.f32 0.03125, %v1239_v37 }
 0x92e   : > { %v1241_v39 = vadd.f32 1e-05, %v1240_v38 }
 0x930   : > { %1695 = vrsqrt.f32 %v1241_v39 }
 0x93a   : > { %v1696_v40 = vpop.eup %1695 }
 0x93b   : > { %v1243_v42 = vmul.f32 %v1696_v40, %v1235_v34 }
 0x93d   : > { %v1250_v44 = vmul.f32 %v1440_v41, %v1243_v42 }
 0x93f   : > { %v1257_v45 = vadd.f32 %v1441_v43, %v1250_v44 }
 0x941   : > { %1258 = vst.msk [vmem:[%s542_s14] sm:$0xff] %vm555_vm1, %v1257_v45 }
 0x942   : > { %1824 = shalt.err (!%p1821_p10)
}
 0x943   : > { %s1825_s18 = scalar_lea.hbm %s2332_s2, 128  ;;  %s1829_s30 = scalar_lea.hbm %s2430_s1, 256 }
 0x944   : > { %p1826_p4 = scmp.ne.s32.totalorder %s2332_s2, %s1825_s18  ;;  %p1830_p11 = scmp.lt.u32.totalorder %s2332_s2, %s2430_s1 }
 0x945   : > { %p1831_p1 = scmp.lt.u32.totalorder %s1829_s30, %s1825_s18  ;;  %p1833_p7 = scmp.lt.u32.totalorder %s1825_s18, %s2332_s2 }
 0x946   : > { %p1827_p5 = pnand %p1826_p4, %p2426_p0 }
 0x947   : > { %p1832_p3 = por %p1831_p1, %p1830_p11 }
 0x948   : > { %p1828_p8 = pneg %p1827_p5 }
 0x949   : > { %p1834_p9 = por %p1833_p7, %p1832_p3 }
 0x94b   : > { %p1835_p12 = pnand %p1834_p9, %p1828_p8 }
 0x94d   : > { %1838 = shalt.err (!%p1835_p12)
}
 0x94e   : > { %1622 = dma.vmem_to_hbm [thread:$0]  (%p2426_p0), %s2334_s28, 128, %s2332_s2, %s1261_s0  }
 0x94f PF: > { %s2431_s23 = sld [smem:[#allocation15_spill]]  ;;  %s2432_s16 = sld [smem:[#allocation16_spill]] }
 0x950   : > { %p2434_p13 = scmp.ge.s32.totalorder %s1885_s21, 2 }
 0x955   : > { %s1304_s24 = sand.u32 1, %s2431_s23   ;;  %p2433_p2 = scmp.ne.s32.totalorder %s2432_s16, 0 }
 0x956   : > { %s1305_s13 = scalar_lea.sflag [#allocation4], %s1304_s24 }
 0x957   : > { %p1638_p6 = pnand %p2434_p13, %p2433_p2 }
 0x959   : > { %1864 = dma.done.wait (!%p1638_p6), %s1305_s13, 128  }
 0x95a   : > { %1866 = vsyncadd (!%p1638_p6), %s1305_s13, 4294967168  ;;  %s1314_s22 = scalar_lea.sflag [#allocation10], %s1304_s24 }
 0x95b   : > { %1868 = dma.done.wait (!%p1638_p6), %s1314_s22, 128  }
 0x95c   : > { %1870 = vsyncadd (!%p1638_p6), %s1314_s22, 4294967168  ;;  %p33_p0 = scmp.ge.s32.totalorder %s2087_s15, 4   ;;  %s2435_s18 = smov %s1877_s19 }
 0x95d   : > { %s2436_s19 = smov %s1881_s20  ;;  %s2437_s20 = smov %s2103_s17 }
 0x95e   : > { %s2438_s21 = smov %s2087_s15  ;;  %35 = sbr.rel (!%p33_p0) target bundleno = 17 (0x11), region = 146 }
 0x965   :  { %1319 = vsyncpa [#allocation3], 1 }
 0x966   :  { %1321 = vsyncpa [#allocation3 + $0x1], 1 }
 0x967   :  { %1322 = vsyncpa [#allocation6], 1 }
 0x968   :  { %1323 = vsyncpa [#allocation4], 1 }
 0x969   :  { %1325 = vsyncpa [#allocation4 + $0x1], 1 }
 0x96a   :  { %1326 = vsyncpa [#allocation10], 1 }
 0x96b   :  { %1328 = vsyncpa [#allocation10 + $0x1], 1 }

</bundles_post_ra>
